<compile_context>
chip_gen: v5e
topology: v5e:2x2
jax: 0.10.0
libtpu: 0.0.40
codegen_flags: <defaults>
</compile_context>

<pallas_src>
import math

import jax
import jax.numpy as jnp
from jax import lax
from jax.experimental import pallas as pl
from jax.experimental.pallas import tpu as pltpu  # noqa: F401  (TPU backend)

# ----------------------------- tiny BERT config -----------------------------
VOCAB = 50
MAX_POS = 16
TYPE_VOCAB = 2
HIDDEN = 32
N_HEADS = 2
HEAD_DIM = HIDDEN // N_HEADS
N_LAYERS = 2
INTERMEDIATE = 64
N_CLASSES = 3
LN_EPS = 1e-12

BATCH = 2
SEQ = 8

_SQRT2 = math.sqrt(2.0)
_ATT_SCALE = 1.0 / math.sqrt(HEAD_DIM)


# ------------------------------ in-kernel math -------------------------------
def _gelu_exact(x):
    # nn.GELU() default = exact erf-based gelu (matches PyTorch).
    return 0.5 * x * (1.0 + lax.erf(x / _SQRT2))


def _layernorm(x, g, b):
    mean = jnp.mean(x, axis=-1, keepdims=True)
    xc = x - mean
    var = jnp.mean(xc * xc, axis=-1, keepdims=True)
    return xc * lax.rsqrt(var + LN_EPS) * g + b


# ------------------------------ fused Pallas kernel ---------------------------
def fused_bert_kernel(
    emb_ref, mask_ref,                       # activations / mask
    gvec_ref,                                # (3, H): [emb_ln_g, emb_ln_b, pool_b]
    wqkv_ref, bqkv_ref, wo_ref,              # per-layer attention (stacked on L)
    lvec_ref,                                # (L, 6, H): [bo, ln1g, ln1b, bo2, ln2g, ln2b]
    wi_ref, bi_ref, wo2_ref,                 # per-layer FFN (stacked on L)
    pw_ref, cw_ref, cb_ref,                  # pooler weight, classifier weight/bias
    o_ref,
):
    gv = gvec_ref[...]                                               # (3, H)

    # Embedding layernorm.
    h = _layernorm(emb_ref[...], gv[0:1, :], gv[1:2, :])             # (B*S, H)

    # Additive key mask, computed once in-kernel (no HBM broadcast tensor).
    mask_add = (1.0 - mask_ref[...]) * -1e9                          # (B, S)
    mask_rows = [mask_add[b:b + 1, :] for b in range(BATCH)]

    for l in range(N_LAYERS):
        lv = lvec_ref[l]                                             # (6, H) single load
        bo, ln1g, ln1b = lv[0:1, :], lv[1:2, :], lv[2:3, :]
        bo2, ln2g, ln2b = lv[3:4, :], lv[4:5, :], lv[5:6, :]

        # ---- fused QKV projection: one (B*S, 3H) matmul ----
        qkv = jnp.dot(h, wqkv_ref[l], preferred_element_type=jnp.float32) + bqkv_ref[l]
        q = qkv[:, 0 * HIDDEN:1 * HIDDEN]
        k = qkv[:, 1 * HIDDEN:2 * HIDDEN]
        v = qkv[:, 2 * HIDDEN:3 * HIDDEN]

        # ---- attention: 2-D dots per (batch, head); heads stay on the lane axis ----
        ctx_rows = []
        for b in range(BATCH):
            r0 = b * SEQ
            m_b = mask_rows[b]                                       # (1, S) over keys
            head_outs = []
            for hd in range(N_HEADS):
                c0 = hd * HEAD_DIM
                q_bh = q[r0:r0 + SEQ, c0:c0 + HEAD_DIM]              # (S, dh)
                k_bh = k[r0:r0 + SEQ, c0:c0 + HEAD_DIM]
                v_bh = v[r0:r0 + SEQ, c0:c0 + HEAD_DIM]
                # q @ k^T without an explicit transpose (contract last dims).
                s = lax.dot_general(
                    q_bh, k_bh, (((1,), (1,)), ((), ())),
                    preferred_element_type=jnp.float32) * _ATT_SCALE
                s = s + m_b
                s_max = jnp.max(s, axis=-1, keepdims=True)
                p = jnp.exp(s - s_max)
                inv = pl.reciprocal(jnp.sum(p, axis=-1, keepdims=True), approx=True)
                head_outs.append(
                    jnp.dot(p * inv, v_bh, preferred_element_type=jnp.float32))
            ctx_rows.append(jnp.concatenate(head_outs, axis=1))      # (S, H)
        ctx = jnp.concatenate(ctx_rows, axis=0)                      # (B*S, H)

        # ---- output projection + residual + LN (fused) ----
        attn_out = jnp.dot(ctx, wo_ref[l], preferred_element_type=jnp.float32) + bo
        h = _layernorm(h + attn_out, ln1g, ln1b)

        # ---- FFN: matmul + gelu + matmul + residual + LN (fused) ----
        inter = _gelu_exact(
            jnp.dot(h, wi_ref[l], preferred_element_type=jnp.float32) + bi_ref[l])
        ffn = jnp.dot(inter, wo2_ref[l], preferred_element_type=jnp.float32) + bo2
        h = _layernorm(h + ffn, ln2g, ln2b)

    # Pooler: tanh(Linear(CLS token)), CLS token = row b*S of each batch.
    cls = jnp.concatenate([h[b * SEQ:b * SEQ + 1, :] for b in range(BATCH)], axis=0)
    pooled = jnp.tanh(
        jnp.dot(cls, pw_ref[...], preferred_element_type=jnp.float32) + gv[2:3, :])

    # TODO(synk): nn.Dropout(p=0.3) is identity in eval/inference; not applied.
    # Classifier head: linear -> gelu -> softmax(dim=1) (last axis for (B, C)).
    logits = _gelu_exact(
        jnp.dot(pooled, cw_ref[...], preferred_element_type=jnp.float32) + cb_ref[...])
    m = jnp.max(logits, axis=-1, keepdims=True)
    e = jnp.exp(logits - m)
    o_ref[...] = (e / jnp.sum(e, axis=-1, keepdims=True)).astype(o_ref.dtype)


# ------------------------------ parameter init ------------------------------
def init_params(key):
    keys = iter(jax.random.split(key, 8 + N_LAYERS * 16))

    def nrm(shape):
        return jax.random.normal(next(keys), shape, jnp.float32) * 0.02

    p = {
        "word_emb": nrm((VOCAB, HIDDEN)),
        "pos_emb": nrm((MAX_POS, HIDDEN)),
        "type_emb": nrm((TYPE_VOCAB, HIDDEN)),
        "emb_ln_g": jnp.ones((HIDDEN,), jnp.float32),
        "emb_ln_b": jnp.zeros((HIDDEN,), jnp.float32),
        "pool_w": nrm((HIDDEN, HIDDEN)),
        "pool_b": jnp.zeros((HIDDEN,), jnp.float32),
        "cls_w": nrm((HIDDEN, N_CLASSES)),
        "cls_b": jnp.zeros((N_CLASSES,), jnp.float32),
        "layers": [],
    }
    for _ in range(N_LAYERS):
        layer = {
            "wq": nrm((HIDDEN, HIDDEN)), "bq": jnp.zeros((HIDDEN,), jnp.float32),
            "wk": nrm((HIDDEN, HIDDEN)), "bk": jnp.zeros((HIDDEN,), jnp.float32),
            "wv": nrm((HIDDEN, HIDDEN)), "bv": jnp.zeros((HIDDEN,), jnp.float32),
            "wo": nrm((HIDDEN, HIDDEN)), "bo": jnp.zeros((HIDDEN,), jnp.float32),
            "ln1_g": jnp.ones((HIDDEN,), jnp.float32),
            "ln1_b": jnp.zeros((HIDDEN,), jnp.float32),
            "wi": nrm((HIDDEN, INTERMEDIATE)),
            "bi": jnp.zeros((INTERMEDIATE,), jnp.float32),
            "wo2": nrm((INTERMEDIATE, HIDDEN)),
            "bo2": jnp.zeros((HIDDEN,), jnp.float32),
            "ln2_g": jnp.ones((HIDDEN,), jnp.float32),
            "ln2_b": jnp.zeros((HIDDEN,), jnp.float32),
        }
        p["layers"].append(layer)
    return p


# ------------------------------- forward pass --------------------------------
def _stack_layer_params(layers):
    """Stack per-layer weights on a leading L axis; fuse wq|wk|wv along lanes and
    pack all per-layer (H,) vectors into one (L, 6, H) tensor (fewer kernel args)."""
    def st(fn):
        return jnp.stack([fn(lp) for lp in layers])

    wqkv = st(lambda lp: jnp.concatenate([lp["wq"], lp["wk"], lp["wv"]], axis=1))
    bqkv = st(lambda lp: jnp.concatenate(
        [lp["bq"], lp["bk"], lp["bv"]]).reshape(1, 3 * HIDDEN))
    wo = st(lambda lp: lp["wo"])
    lvec = st(lambda lp: jnp.stack(
        [lp["bo"], lp["ln1_g"], lp["ln1_b"],
         lp["bo2"], lp["ln2_g"], lp["ln2_b"]], axis=0))          # (6, H)
    wi = st(lambda lp: lp["wi"])
    bi = st(lambda lp: lp["bi"].reshape(1, INTERMEDIATE))
    wo2 = st(lambda lp: lp["wo2"])
    return wqkv, bqkv, wo, lvec, wi, bi, wo2


@jax.jit
def bert_sentiment_forward(params, input_ids, attention_mask):
    B, S = input_ids.shape
    assert B == BATCH and S == SEQ

    # Embeddings (data-dependent gather stays as plain-JAX glue).
    word = params["word_emb"][input_ids]                       # (B, S, H)
    pos = params["pos_emb"][:S][None, :, :]                    # (1, S, H)
    tok = params["type_emb"][0][None, None, :]                 # (1, 1, H) token_type_ids = 0
    emb = (word + pos + tok).reshape(B * S, HIDDEN)

    mask = attention_mask.astype(jnp.float32)                  # (B, S), 1/0

    # Packed global vectors: emb LN gamma/beta + pooler bias -> one (3, H) tensor.
    gvec = jnp.stack(
        [params["emb_ln_g"], params["emb_ln_b"], params["pool_b"]], axis=0)

    wqkv, bqkv, wo, lvec, wi, bi, wo2 = _stack_layer_params(params["layers"])

    return pl.pallas_call(
        fused_bert_kernel,
        out_shape=jax.ShapeDtypeStruct((B, N_CLASSES), jnp.float32),
    )(
        emb, mask, gvec,
        wqkv, bqkv, wo, lvec, wi, bi, wo2,
        params["pool_w"], params["cls_w"], params["cls_b"].reshape(1, N_CLASSES),
    )


# ----------------------------------- main ------------------------------------
if __name__ == "__main__":
    key = jax.random.PRNGKey(0)
    k_params, k_ids = jax.random.split(key)

    params = init_params(k_params)

    input_ids = jax.random.randint(k_ids, (BATCH, SEQ), 0, VOCAB, dtype=jnp.int32)
    attention_mask = jnp.array(
        [[1] * SEQ,
         [1] * (SEQ - 2) + [0, 0]], dtype=jnp.int32)           # second example padded

    probs = bert_sentiment_forward(params, input_ids, attention_mask)
    probs = jax.block_until_ready(probs)

    assert probs.shape == (BATCH, N_CLASSES)
    assert bool(jnp.all(jnp.isfinite(probs)))
    assert bool(jnp.allclose(jnp.sum(probs, axis=1), 1.0, atol=1e-5))
    print("KERNEL_OK")
</pallas_src>

<mosaic_0001>
module attributes {stable_mosaic.version = 11 : i64} {
  func.func @fused_bert_kernel(%arg0: memref<16x32xf32, #tpu.memory_space<vmem>>, %arg1: memref<2x8xf32, #tpu.memory_space<vmem>>, %arg2: memref<3x32xf32, #tpu.memory_space<vmem>>, %arg3: memref<2x32x96xf32, #tpu.memory_space<vmem>>, %arg4: memref<2x1x96xf32, #tpu.memory_space<vmem>>, %arg5: memref<2x32x32xf32, #tpu.memory_space<vmem>>, %arg6: memref<2x6x32xf32, #tpu.memory_space<vmem>>, %arg7: memref<2x32x64xf32, #tpu.memory_space<vmem>>, %arg8: memref<2x1x64xf32, #tpu.memory_space<vmem>>, %arg9: memref<2x64x32xf32, #tpu.memory_space<vmem>>, %arg10: memref<32x32xf32, #tpu.memory_space<vmem>>, %arg11: memref<32x3xf32, #tpu.memory_space<vmem>>, %arg12: memref<1x3xf32, #tpu.memory_space<vmem>>, %arg13: memref<2x3xf32, #tpu.memory_space<vmem>>) attributes {dimension_semantics = [], scalar_prefetch = 0 : i64, scratch_operands = 0 : i64, tpu.core_type = #tpu.core_type<tc>} {
    %c0 = arith.constant 0 : index
    %c0_0 = arith.constant 0 : index
    %0 = vector.load %arg2[%c0, %c0_0] : memref<3x32xf32, #tpu.memory_space<vmem>>, vector<3x32xf32>
    %c0_1 = arith.constant 0 : index
    %c0_2 = arith.constant 0 : index
    %1 = vector.load %arg0[%c0_1, %c0_2] : memref<16x32xf32, #tpu.memory_space<vmem>>, vector<16x32xf32>
    %2 = vector.extract_strided_slice %0 {offsets = [0, 0], sizes = [1, 32], strides = [1, 1]} : vector<3x32xf32> to vector<1x32xf32>
    %3 = vector.extract_strided_slice %0 {offsets = [1, 0], sizes = [1, 32], strides = [1, 1]} : vector<3x32xf32> to vector<1x32xf32>
    %cst = arith.constant dense<0.000000e+00> : vector<16xf32>
    %4 = vector.multi_reduction <add>, %1, %cst [1] : vector<16x32xf32> to vector<16xf32>
    %5 = vector.shape_cast %4 : vector<16xf32> to vector<16x1xf32>
    %cst_3 = arith.constant 3.200000e+01 : f32
    %6 = vector.broadcast %cst_3 : f32 to vector<16x1xf32>
    %7 = arith.divf %5, %6 : vector<16x1xf32>
    %8 = vector.broadcast %7 : vector<16x1xf32> to vector<16x32xf32>
    %9 = arith.subf %1, %8 : vector<16x32xf32>
    %10 = arith.mulf %9, %9 : vector<16x32xf32>
    %cst_4 = arith.constant dense<0.000000e+00> : vector<16xf32>
    %11 = vector.multi_reduction <add>, %10, %cst_4 [1] : vector<16x32xf32> to vector<16xf32>
    %12 = vector.shape_cast %11 : vector<16xf32> to vector<16x1xf32>
    %cst_5 = arith.constant 3.200000e+01 : f32
    %13 = vector.broadcast %cst_5 : f32 to vector<16x1xf32>
    %14 = arith.divf %12, %13 : vector<16x1xf32>
    %cst_6 = arith.constant 9.99999996E-13 : f32
    %15 = vector.broadcast %cst_6 : f32 to vector<16x1xf32>
    %16 = arith.addf %14, %15 : vector<16x1xf32>
    %17 = math.rsqrt %16 : vector<16x1xf32>
    %18 = vector.broadcast %17 : vector<16x1xf32> to vector<16x32xf32>
    %19 = arith.mulf %9, %18 : vector<16x32xf32>
    %20 = vector.broadcast %2 : vector<1x32xf32> to vector<16x32xf32>
    %21 = arith.mulf %19, %20 : vector<16x32xf32>
    %22 = vector.broadcast %3 : vector<1x32xf32> to vector<16x32xf32>
    %23 = arith.addf %21, %22 : vector<16x32xf32>
    %c0_7 = arith.constant 0 : index
    %c0_8 = arith.constant 0 : index
    %24 = vector.load %arg1[%c0_7, %c0_8] : memref<2x8xf32, #tpu.memory_space<vmem>>, vector<2x8xf32>
    %cst_9 = arith.constant 1.000000e+00 : f32
    %25 = vector.broadcast %cst_9 : f32 to vector<2x8xf32>
    %26 = arith.subf %25, %24 : vector<2x8xf32>
    %cst_10 = arith.constant -1.000000e+09 : f32
    %27 = vector.broadcast %cst_10 : f32 to vector<2x8xf32>
    %28 = arith.mulf %26, %27 : vector<2x8xf32>
    %29 = vector.extract_strided_slice %28 {offsets = [0, 0], sizes = [1, 8], strides = [1, 1]} : vector<2x8xf32> to vector<1x8xf32>
    %30 = vector.extract_strided_slice %28 {offsets = [1, 0], sizes = [1, 8], strides = [1, 1]} : vector<2x8xf32> to vector<1x8xf32>
    %c0_11 = arith.constant 0 : index
    %c0_12 = arith.constant 0 : index
    %c0_13 = arith.constant 0 : index
    %31 = vector.load %arg6[%c0_11, %c0_12, %c0_13] : memref<2x6x32xf32, #tpu.memory_space<vmem>>, vector<1x6x32xf32>
    %32 = vector.shape_cast %31 : vector<1x6x32xf32> to vector<6x32xf32>
    %33 = vector.extract_strided_slice %32 {offsets = [0, 0], sizes = [1, 32], strides = [1, 1]} : vector<6x32xf32> to vector<1x32xf32>
    %34 = vector.extract_strided_slice %32 {offsets = [1, 0], sizes = [1, 32], strides = [1, 1]} : vector<6x32xf32> to vector<1x32xf32>
    %35 = vector.extract_strided_slice %32 {offsets = [2, 0], sizes = [1, 32], strides = [1, 1]} : vector<6x32xf32> to vector<1x32xf32>
    %36 = vector.extract_strided_slice %32 {offsets = [3, 0], sizes = [1, 32], strides = [1, 1]} : vector<6x32xf32> to vector<1x32xf32>
    %37 = vector.extract_strided_slice %32 {offsets = [4, 0], sizes = [1, 32], strides = [1, 1]} : vector<6x32xf32> to vector<1x32xf32>
    %38 = vector.extract_strided_slice %32 {offsets = [5, 0], sizes = [1, 32], strides = [1, 1]} : vector<6x32xf32> to vector<1x32xf32>
    %c0_14 = arith.constant 0 : index
    %c0_15 = arith.constant 0 : index
    %c0_16 = arith.constant 0 : index
    %39 = vector.load %arg3[%c0_14, %c0_15, %c0_16] : memref<2x32x96xf32, #tpu.memory_space<vmem>>, vector<1x32x96xf32>
    %40 = vector.shape_cast %39 : vector<1x32x96xf32> to vector<32x96xf32>
    %cst_17 = arith.constant dense<0.000000e+00> : vector<16x96xf32>
    %41 = tpu.matmul %23, %40, %cst_17 {dimension_numbers = #tpu.dot_dimension_numbers<[1], [0], [0], [1], [0, 0, 1, 1], [], []>} : vector<16x32xf32>, vector<32x96xf32>, vector<16x96xf32> -> vector<16x96xf32>
    %c0_18 = arith.constant 0 : index
    %c0_19 = arith.constant 0 : index
    %c0_20 = arith.constant 0 : index
    %42 = vector.load %arg4[%c0_18, %c0_19, %c0_20] : memref<2x1x96xf32, #tpu.memory_space<vmem>>, vector<1x1x96xf32>
    %43 = vector.shape_cast %42 : vector<1x1x96xf32> to vector<1x96xf32>
    %44 = vector.broadcast %43 : vector<1x96xf32> to vector<16x96xf32>
    %45 = arith.addf %41, %44 : vector<16x96xf32>
    %46 = vector.extract_strided_slice %45 {offsets = [0, 0], sizes = [16, 32], strides = [1, 1]} : vector<16x96xf32> to vector<16x32xf32>
    %47 = vector.extract_strided_slice %45 {offsets = [0, 32], sizes = [16, 32], strides = [1, 1]} : vector<16x96xf32> to vector<16x32xf32>
    %48 = vector.extract_strided_slice %45 {offsets = [0, 64], sizes = [16, 32], strides = [1, 1]} : vector<16x96xf32> to vector<16x32xf32>
    %49 = vector.extract_strided_slice %46 {offsets = [0, 0], sizes = [8, 16], strides = [1, 1]} : vector<16x32xf32> to vector<8x16xf32>
    %50 = vector.extract_strided_slice %47 {offsets = [0, 0], sizes = [8, 16], strides = [1, 1]} : vector<16x32xf32> to vector<8x16xf32>
    %51 = vector.extract_strided_slice %48 {offsets = [0, 0], sizes = [8, 16], strides = [1, 1]} : vector<16x32xf32> to vector<8x16xf32>
    %cst_21 = arith.constant dense<0.000000e+00> : vector<8x8xf32>
    %52 = tpu.matmul %49, %50, %cst_21 {dimension_numbers = #tpu.dot_dimension_numbers<[1], [1], [0], [0], [0, 0, 1, 0], [], []>} : vector<8x16xf32>, vector<8x16xf32>, vector<8x8xf32> -> vector<8x8xf32>
    %cst_22 = arith.constant 2.500000e-01 : f32
    %53 = vector.broadcast %cst_22 : f32 to vector<8x8xf32>
    %54 = arith.mulf %52, %53 : vector<8x8xf32>
    %55 = vector.broadcast %29 : vector<1x8xf32> to vector<8x8xf32>
    %56 = arith.addf %54, %55 : vector<8x8xf32>
    %cst_23 = arith.constant dense<0xFF800000> : vector<8xf32>
    %57 = vector.multi_reduction <maximumf>, %56, %cst_23 [1] : vector<8x8xf32> to vector<8xf32>
    %58 = vector.shape_cast %57 : vector<8xf32> to vector<8x1xf32>
    %59 = vector.broadcast %58 : vector<8x1xf32> to vector<8x8xf32>
    %60 = arith.subf %56, %59 : vector<8x8xf32>
    %61 = math.exp %60 : vector<8x8xf32>
    %cst_24 = arith.constant dense<0.000000e+00> : vector<8xf32>
    %62 = vector.multi_reduction <add>, %61, %cst_24 [1] : vector<8x8xf32> to vector<8xf32>
    %63 = vector.shape_cast %62 : vector<8xf32> to vector<8x1xf32>
    %64 = tpu.reciprocal %63 {approx = true} : vector<8x1xf32> -> vector<8x1xf32>
    %65 = vector.broadcast %64 : vector<8x1xf32> to vector<8x8xf32>
    %66 = arith.mulf %61, %65 : vector<8x8xf32>
    %cst_25 = arith.constant dense<0.000000e+00> : vector<8x16xf32>
    %67 = tpu.matmul %66, %51, %cst_25 {dimension_numbers = #tpu.dot_dimension_numbers<[1], [0], [0], [1], [0, 0, 1, 1], [], []>} : vector<8x8xf32>, vector<8x16xf32>, vector<8x16xf32> -> vector<8x16xf32>
    %68 = vector.extract_strided_slice %46 {offsets = [0, 16], sizes = [8, 16], strides = [1, 1]} : vector<16x32xf32> to vector<8x16xf32>
    %69 = vector.extract_strided_slice %47 {offsets = [0, 16], sizes = [8, 16], strides = [1, 1]} : vector<16x32xf32> to vector<8x16xf32>
    %70 = vector.extract_strided_slice %48 {offsets = [0, 16], sizes = [8, 16], strides = [1, 1]} : vector<16x32xf32> to vector<8x16xf32>
    %cst_26 = arith.constant dense<0.000000e+00> : vector<8x8xf32>
    %71 = tpu.matmul %68, %69, %cst_26 {dimension_numbers = #tpu.dot_dimension_numbers<[1], [1], [0], [0], [0, 0, 1, 0], [], []>} : vector<8x16xf32>, vector<8x16xf32>, vector<8x8xf32> -> vector<8x8xf32>
    %cst_27 = arith.constant 2.500000e-01 : f32
    %72 = vector.broadcast %cst_27 : f32 to vector<8x8xf32>
    %73 = arith.mulf %71, %72 : vector<8x8xf32>
    %74 = vector.broadcast %29 : vector<1x8xf32> to vector<8x8xf32>
    %75 = arith.addf %73, %74 : vector<8x8xf32>
    %cst_28 = arith.constant dense<0xFF800000> : vector<8xf32>
    %76 = vector.multi_reduction <maximumf>, %75, %cst_28 [1] : vector<8x8xf32> to vector<8xf32>
    %77 = vector.shape_cast %76 : vector<8xf32> to vector<8x1xf32>
    %78 = vector.broadcast %77 : vector<8x1xf32> to vector<8x8xf32>
    %79 = arith.subf %75, %78 : vector<8x8xf32>
    %80 = math.exp %79 : vector<8x8xf32>
    %cst_29 = arith.constant dense<0.000000e+00> : vector<8xf32>
    %81 = vector.multi_reduction <add>, %80, %cst_29 [1] : vector<8x8xf32> to vector<8xf32>
    %82 = vector.shape_cast %81 : vector<8xf32> to vector<8x1xf32>
    %83 = tpu.reciprocal %82 {approx = true} : vector<8x1xf32> -> vector<8x1xf32>
    %84 = vector.broadcast %83 : vector<8x1xf32> to vector<8x8xf32>
    %85 = arith.mulf %80, %84 : vector<8x8xf32>
    %cst_30 = arith.constant dense<0.000000e+00> : vector<8x16xf32>
    %86 = tpu.matmul %85, %70, %cst_30 {dimension_numbers = #tpu.dot_dimension_numbers<[1], [0], [0], [1], [0, 0, 1, 1], [], []>} : vector<8x8xf32>, vector<8x16xf32>, vector<8x16xf32> -> vector<8x16xf32>
    %87 = tpu.concatenate %67, %86 in 1 : vector<8x16xf32>, vector<8x16xf32> -> vector<8x32xf32>
    %88 = vector.extract_strided_slice %46 {offsets = [8, 0], sizes = [8, 16], strides = [1, 1]} : vector<16x32xf32> to vector<8x16xf32>
    %89 = vector.extract_strided_slice %47 {offsets = [8, 0], sizes = [8, 16], strides = [1, 1]} : vector<16x32xf32> to vector<8x16xf32>
    %90 = vector.extract_strided_slice %48 {offsets = [8, 0], sizes = [8, 16], strides = [1, 1]} : vector<16x32xf32> to vector<8x16xf32>
    %cst_31 = arith.constant dense<0.000000e+00> : vector<8x8xf32>
    %91 = tpu.matmul %88, %89, %cst_31 {dimension_numbers = #tpu.dot_dimension_numbers<[1], [1], [0], [0], [0, 0, 1, 0], [], []>} : vector<8x16xf32>, vector<8x16xf32>, vector<8x8xf32> -> vector<8x8xf32>
    %cst_32 = arith.constant 2.500000e-01 : f32
    %92 = vector.broadcast %cst_32 : f32 to vector<8x8xf32>
    %93 = arith.mulf %91, %92 : vector<8x8xf32>
    %94 = vector.broadcast %30 : vector<1x8xf32> to vector<8x8xf32>
    %95 = arith.addf %93, %94 : vector<8x8xf32>
    %cst_33 = arith.constant dense<0xFF800000> : vector<8xf32>
    %96 = vector.multi_reduction <maximumf>, %95, %cst_33 [1] : vector<8x8xf32> to vector<8xf32>
    %97 = vector.shape_cast %96 : vector<8xf32> to vector<8x1xf32>
    %98 = vector.broadcast %97 : vector<8x1xf32> to vector<8x8xf32>
    %99 = arith.subf %95, %98 : vector<8x8xf32>
    %100 = math.exp %99 : vector<8x8xf32>
    %cst_34 = arith.constant dense<0.000000e+00> : vector<8xf32>
    %101 = vector.multi_reduction <add>, %100, %cst_34 [1] : vector<8x8xf32> to vector<8xf32>
    %102 = vector.shape_cast %101 : vector<8xf32> to vector<8x1xf32>
    %103 = tpu.reciprocal %102 {approx = true} : vector<8x1xf32> -> vector<8x1xf32>
    %104 = vector.broadcast %103 : vector<8x1xf32> to vector<8x8xf32>
    %105 = arith.mulf %100, %104 : vector<8x8xf32>
    %cst_35 = arith.constant dense<0.000000e+00> : vector<8x16xf32>
    %106 = tpu.matmul %105, %90, %cst_35 {dimension_numbers = #tpu.dot_dimension_numbers<[1], [0], [0], [1], [0, 0, 1, 1], [], []>} : vector<8x8xf32>, vector<8x16xf32>, vector<8x16xf32> -> vector<8x16xf32>
    %107 = vector.extract_strided_slice %46 {offsets = [8, 16], sizes = [8, 16], strides = [1, 1]} : vector<16x32xf32> to vector<8x16xf32>
    %108 = vector.extract_strided_slice %47 {offsets = [8, 16], sizes = [8, 16], strides = [1, 1]} : vector<16x32xf32> to vector<8x16xf32>
    %109 = vector.extract_strided_slice %48 {offsets = [8, 16], sizes = [8, 16], strides = [1, 1]} : vector<16x32xf32> to vector<8x16xf32>
    %cst_36 = arith.constant dense<0.000000e+00> : vector<8x8xf32>
    %110 = tpu.matmul %107, %108, %cst_36 {dimension_numbers = #tpu.dot_dimension_numbers<[1], [1], [0], [0], [0, 0, 1, 0], [], []>} : vector<8x16xf32>, vector<8x16xf32>, vector<8x8xf32> -> vector<8x8xf32>
    %cst_37 = arith.constant 2.500000e-01 : f32
    %111 = vector.broadcast %cst_37 : f32 to vector<8x8xf32>
    %112 = arith.mulf %110, %111 : vector<8x8xf32>
    %113 = vector.broadcast %30 : vector<1x8xf32> to vector<8x8xf32>
    %114 = arith.addf %112, %113 : vector<8x8xf32>
    %cst_38 = arith.constant dense<0xFF800000> : vector<8xf32>
    %115 = vector.multi_reduction <maximumf>, %114, %cst_38 [1] : vector<8x8xf32> to vector<8xf32>
    %116 = vector.shape_cast %115 : vector<8xf32> to vector<8x1xf32>
    %117 = vector.broadcast %116 : vector<8x1xf32> to vector<8x8xf32>
    %118 = arith.subf %114, %117 : vector<8x8xf32>
    %119 = math.exp %118 : vector<8x8xf32>
    %cst_39 = arith.constant dense<0.000000e+00> : vector<8xf32>
    %120 = vector.multi_reduction <add>, %119, %cst_39 [1] : vector<8x8xf32> to vector<8xf32>
    %121 = vector.shape_cast %120 : vector<8xf32> to vector<8x1xf32>
    %122 = tpu.reciprocal %121 {approx = true} : vector<8x1xf32> -> vector<8x1xf32>
    %123 = vector.broadcast %122 : vector<8x1xf32> to vector<8x8xf32>
    %124 = arith.mulf %119, %123 : vector<8x8xf32>
    %cst_40 = arith.constant dense<0.000000e+00> : vector<8x16xf32>
    %125 = tpu.matmul %124, %109, %cst_40 {dimension_numbers = #tpu.dot_dimension_numbers<[1], [0], [0], [1], [0, 0, 1, 1], [], []>} : vector<8x8xf32>, vector<8x16xf32>, vector<8x16xf32> -> vector<8x16xf32>
    %126 = tpu.concatenate %106, %125 in 1 : vector<8x16xf32>, vector<8x16xf32> -> vector<8x32xf32>
    %127 = tpu.concatenate %87, %126 in 0 : vector<8x32xf32>, vector<8x32xf32> -> vector<16x32xf32>
    %c0_41 = arith.constant 0 : index
    %c0_42 = arith.constant 0 : index
    %c0_43 = arith.constant 0 : index
    %128 = vector.load %arg5[%c0_41, %c0_42, %c0_43] : memref<2x32x32xf32, #tpu.memory_space<vmem>>, vector<1x32x32xf32>
    %129 = vector.shape_cast %128 : vector<1x32x32xf32> to vector<32x32xf32>
    %cst_44 = arith.constant dense<0.000000e+00> : vector<16x32xf32>
    %130 = tpu.matmul %127, %129, %cst_44 {dimension_numbers = #tpu.dot_dimension_numbers<[1], [0], [0], [1], [0, 0, 1, 1], [], []>} : vector<16x32xf32>, vector<32x32xf32>, vector<16x32xf32> -> vector<16x32xf32>
    %131 = vector.broadcast %33 : vector<1x32xf32> to vector<16x32xf32>
    %132 = arith.addf %130, %131 : vector<16x32xf32>
    %133 = arith.addf %23, %132 : vector<16x32xf32>
    %cst_45 = arith.constant dense<0.000000e+00> : vector<16xf32>
    %134 = vector.multi_reduction <add>, %133, %cst_45 [1] : vector<16x32xf32> to vector<16xf32>
    %135 = vector.shape_cast %134 : vector<16xf32> to vector<16x1xf32>
    %cst_46 = arith.constant 3.200000e+01 : f32
    %136 = vector.broadcast %cst_46 : f32 to vector<16x1xf32>
    %137 = arith.divf %135, %136 : vector<16x1xf32>
    %138 = vector.broadcast %137 : vector<16x1xf32> to vector<16x32xf32>
    %139 = arith.subf %133, %138 : vector<16x32xf32>
    %140 = arith.mulf %139, %139 : vector<16x32xf32>
    %cst_47 = arith.constant dense<0.000000e+00> : vector<16xf32>
    %141 = vector.multi_reduction <add>, %140, %cst_47 [1] : vector<16x32xf32> to vector<16xf32>
    %142 = vector.shape_cast %141 : vector<16xf32> to vector<16x1xf32>
    %cst_48 = arith.constant 3.200000e+01 : f32
    %143 = vector.broadcast %cst_48 : f32 to vector<16x1xf32>
    %144 = arith.divf %142, %143 : vector<16x1xf32>
    %cst_49 = arith.constant 9.99999996E-13 : f32
    %145 = vector.broadcast %cst_49 : f32 to vector<16x1xf32>
    %146 = arith.addf %144, %145 : vector<16x1xf32>
    %147 = math.rsqrt %146 : vector<16x1xf32>
    %148 = vector.broadcast %147 : vector<16x1xf32> to vector<16x32xf32>
    %149 = arith.mulf %139, %148 : vector<16x32xf32>
    %150 = vector.broadcast %34 : vector<1x32xf32> to vector<16x32xf32>
    %151 = arith.mulf %149, %150 : vector<16x32xf32>
    %152 = vector.broadcast %35 : vector<1x32xf32> to vector<16x32xf32>
    %153 = arith.addf %151, %152 : vector<16x32xf32>
    %c0_50 = arith.constant 0 : index
    %c0_51 = arith.constant 0 : index
    %c0_52 = arith.constant 0 : index
    %154 = vector.load %arg7[%c0_50, %c0_51, %c0_52] : memref<2x32x64xf32, #tpu.memory_space<vmem>>, vector<1x32x64xf32>
    %155 = vector.shape_cast %154 : vector<1x32x64xf32> to vector<32x64xf32>
    %cst_53 = arith.constant dense<0.000000e+00> : vector<16x64xf32>
    %156 = tpu.matmul %153, %155, %cst_53 {dimension_numbers = #tpu.dot_dimension_numbers<[1], [0], [0], [1], [0, 0, 1, 1], [], []>} : vector<16x32xf32>, vector<32x64xf32>, vector<16x64xf32> -> vector<16x64xf32>
    %c0_54 = arith.constant 0 : index
    %c0_55 = arith.constant 0 : index
    %c0_56 = arith.constant 0 : index
    %157 = vector.load %arg8[%c0_54, %c0_55, %c0_56] : memref<2x1x64xf32, #tpu.memory_space<vmem>>, vector<1x1x64xf32>
    %158 = vector.shape_cast %157 : vector<1x1x64xf32> to vector<1x64xf32>
    %159 = vector.broadcast %158 : vector<1x64xf32> to vector<16x64xf32>
    %160 = arith.addf %156, %159 : vector<16x64xf32>
    %cst_57 = arith.constant 5.000000e-01 : f32
    %161 = vector.broadcast %cst_57 : f32 to vector<16x64xf32>
    %162 = arith.mulf %161, %160 : vector<16x64xf32>
    %cst_58 = arith.constant 1.41421354 : f32
    %163 = vector.broadcast %cst_58 : f32 to vector<16x64xf32>
    %164 = arith.divf %160, %163 : vector<16x64xf32>
    %165 = math.erf %164 : vector<16x64xf32>
    %cst_59 = arith.constant 1.000000e+00 : f32
    %166 = vector.broadcast %cst_59 : f32 to vector<16x64xf32>
    %167 = arith.addf %166, %165 : vector<16x64xf32>
    %168 = arith.mulf %162, %167 : vector<16x64xf32>
    %c0_60 = arith.constant 0 : index
    %c0_61 = arith.constant 0 : index
    %c0_62 = arith.constant 0 : index
    %169 = vector.load %arg9[%c0_60, %c0_61, %c0_62] : memref<2x64x32xf32, #tpu.memory_space<vmem>>, vector<1x64x32xf32>
    %170 = vector.shape_cast %169 : vector<1x64x32xf32> to vector<64x32xf32>
    %cst_63 = arith.constant dense<0.000000e+00> : vector<16x32xf32>
    %171 = tpu.matmul %168, %170, %cst_63 {dimension_numbers = #tpu.dot_dimension_numbers<[1], [0], [0], [1], [0, 0, 1, 1], [], []>} : vector<16x64xf32>, vector<64x32xf32>, vector<16x32xf32> -> vector<16x32xf32>
    %172 = vector.broadcast %36 : vector<1x32xf32> to vector<16x32xf32>
    %173 = arith.addf %171, %172 : vector<16x32xf32>
    %174 = arith.addf %153, %173 : vector<16x32xf32>
    %cst_64 = arith.constant dense<0.000000e+00> : vector<16xf32>
    %175 = vector.multi_reduction <add>, %174, %cst_64 [1] : vector<16x32xf32> to vector<16xf32>
    %176 = vector.shape_cast %175 : vector<16xf32> to vector<16x1xf32>
    %cst_65 = arith.constant 3.200000e+01 : f32
    %177 = vector.broadcast %cst_65 : f32 to vector<16x1xf32>
    %178 = arith.divf %176, %177 : vector<16x1xf32>
    %179 = vector.broadcast %178 : vector<16x1xf32> to vector<16x32xf32>
    %180 = arith.subf %174, %179 : vector<16x32xf32>
    %181 = arith.mulf %180, %180 : vector<16x32xf32>
    %cst_66 = arith.constant dense<0.000000e+00> : vector<16xf32>
    %182 = vector.multi_reduction <add>, %181, %cst_66 [1] : vector<16x32xf32> to vector<16xf32>
    %183 = vector.shape_cast %182 : vector<16xf32> to vector<16x1xf32>
    %cst_67 = arith.constant 3.200000e+01 : f32
    %184 = vector.broadcast %cst_67 : f32 to vector<16x1xf32>
    %185 = arith.divf %183, %184 : vector<16x1xf32>
    %cst_68 = arith.constant 9.99999996E-13 : f32
    %186 = vector.broadcast %cst_68 : f32 to vector<16x1xf32>
    %187 = arith.addf %185, %186 : vector<16x1xf32>
    %188 = math.rsqrt %187 : vector<16x1xf32>
    %189 = vector.broadcast %188 : vector<16x1xf32> to vector<16x32xf32>
    %190 = arith.mulf %180, %189 : vector<16x32xf32>
    %191 = vector.broadcast %37 : vector<1x32xf32> to vector<16x32xf32>
    %192 = arith.mulf %190, %191 : vector<16x32xf32>
    %193 = vector.broadcast %38 : vector<1x32xf32> to vector<16x32xf32>
    %194 = arith.addf %192, %193 : vector<16x32xf32>
    %c1 = arith.constant 1 : index
    %c0_69 = arith.constant 0 : index
    %c0_70 = arith.constant 0 : index
    %195 = vector.load %arg6[%c1, %c0_69, %c0_70] : memref<2x6x32xf32, #tpu.memory_space<vmem>>, vector<1x6x32xf32>
    %196 = vector.shape_cast %195 : vector<1x6x32xf32> to vector<6x32xf32>
    %197 = vector.extract_strided_slice %196 {offsets = [0, 0], sizes = [1, 32], strides = [1, 1]} : vector<6x32xf32> to vector<1x32xf32>
    %198 = vector.extract_strided_slice %196 {offsets = [1, 0], sizes = [1, 32], strides = [1, 1]} : vector<6x32xf32> to vector<1x32xf32>
    %199 = vector.extract_strided_slice %196 {offsets = [2, 0], sizes = [1, 32], strides = [1, 1]} : vector<6x32xf32> to vector<1x32xf32>
    %200 = vector.extract_strided_slice %196 {offsets = [3, 0], sizes = [1, 32], strides = [1, 1]} : vector<6x32xf32> to vector<1x32xf32>
    %201 = vector.extract_strided_slice %196 {offsets = [4, 0], sizes = [1, 32], strides = [1, 1]} : vector<6x32xf32> to vector<1x32xf32>
    %202 = vector.extract_strided_slice %196 {offsets = [5, 0], sizes = [1, 32], strides = [1, 1]} : vector<6x32xf32> to vector<1x32xf32>
    %c1_71 = arith.constant 1 : index
    %c0_72 = arith.constant 0 : index
    %c0_73 = arith.constant 0 : index
    %203 = vector.load %arg3[%c1_71, %c0_72, %c0_73] : memref<2x32x96xf32, #tpu.memory_space<vmem>>, vector<1x32x96xf32>
    %204 = vector.shape_cast %203 : vector<1x32x96xf32> to vector<32x96xf32>
    %cst_74 = arith.constant dense<0.000000e+00> : vector<16x96xf32>
    %205 = tpu.matmul %194, %204, %cst_74 {dimension_numbers = #tpu.dot_dimension_numbers<[1], [0], [0], [1], [0, 0, 1, 1], [], []>} : vector<16x32xf32>, vector<32x96xf32>, vector<16x96xf32> -> vector<16x96xf32>
    %c1_75 = arith.constant 1 : index
    %c0_76 = arith.constant 0 : index
    %c0_77 = arith.constant 0 : index
    %206 = vector.load %arg4[%c1_75, %c0_76, %c0_77] : memref<2x1x96xf32, #tpu.memory_space<vmem>>, vector<1x1x96xf32>
    %207 = vector.shape_cast %206 : vector<1x1x96xf32> to vector<1x96xf32>
    %208 = vector.broadcast %207 : vector<1x96xf32> to vector<16x96xf32>
    %209 = arith.addf %205, %208 : vector<16x96xf32>
    %210 = vector.extract_strided_slice %209 {offsets = [0, 0], sizes = [16, 32], strides = [1, 1]} : vector<16x96xf32> to vector<16x32xf32>
    %211 = vector.extract_strided_slice %209 {offsets = [0, 32], sizes = [16, 32], strides = [1, 1]} : vector<16x96xf32> to vector<16x32xf32>
    %212 = vector.extract_strided_slice %209 {offsets = [0, 64], sizes = [16, 32], strides = [1, 1]} : vector<16x96xf32> to vector<16x32xf32>
    %213 = vector.extract_strided_slice %210 {offsets = [0, 0], sizes = [8, 16], strides = [1, 1]} : vector<16x32xf32> to vector<8x16xf32>
    %214 = vector.extract_strided_slice %211 {offsets = [0, 0], sizes = [8, 16], strides = [1, 1]} : vector<16x32xf32> to vector<8x16xf32>
    %215 = vector.extract_strided_slice %212 {offsets = [0, 0], sizes = [8, 16], strides = [1, 1]} : vector<16x32xf32> to vector<8x16xf32>
    %cst_78 = arith.constant dense<0.000000e+00> : vector<8x8xf32>
    %216 = tpu.matmul %213, %214, %cst_78 {dimension_numbers = #tpu.dot_dimension_numbers<[1], [1], [0], [0], [0, 0, 1, 0], [], []>} : vector<8x16xf32>, vector<8x16xf32>, vector<8x8xf32> -> vector<8x8xf32>
    %cst_79 = arith.constant 2.500000e-01 : f32
    %217 = vector.broadcast %cst_79 : f32 to vector<8x8xf32>
    %218 = arith.mulf %216, %217 : vector<8x8xf32>
    %219 = vector.broadcast %29 : vector<1x8xf32> to vector<8x8xf32>
    %220 = arith.addf %218, %219 : vector<8x8xf32>
    %cst_80 = arith.constant dense<0xFF800000> : vector<8xf32>
    %221 = vector.multi_reduction <maximumf>, %220, %cst_80 [1] : vector<8x8xf32> to vector<8xf32>
    %222 = vector.shape_cast %221 : vector<8xf32> to vector<8x1xf32>
    %223 = vector.broadcast %222 : vector<8x1xf32> to vector<8x8xf32>
    %224 = arith.subf %220, %223 : vector<8x8xf32>
    %225 = math.exp %224 : vector<8x8xf32>
    %cst_81 = arith.constant dense<0.000000e+00> : vector<8xf32>
    %226 = vector.multi_reduction <add>, %225, %cst_81 [1] : vector<8x8xf32> to vector<8xf32>
    %227 = vector.shape_cast %226 : vector<8xf32> to vector<8x1xf32>
    %228 = tpu.reciprocal %227 {approx = true} : vector<8x1xf32> -> vector<8x1xf32>
    %229 = vector.broadcast %228 : vector<8x1xf32> to vector<8x8xf32>
    %230 = arith.mulf %225, %229 : vector<8x8xf32>
    %cst_82 = arith.constant dense<0.000000e+00> : vector<8x16xf32>
    %231 = tpu.matmul %230, %215, %cst_82 {dimension_numbers = #tpu.dot_dimension_numbers<[1], [0], [0], [1], [0, 0, 1, 1], [], []>} : vector<8x8xf32>, vector<8x16xf32>, vector<8x16xf32> -> vector<8x16xf32>
    %232 = vector.extract_strided_slice %210 {offsets = [0, 16], sizes = [8, 16], strides = [1, 1]} : vector<16x32xf32> to vector<8x16xf32>
    %233 = vector.extract_strided_slice %211 {offsets = [0, 16], sizes = [8, 16], strides = [1, 1]} : vector<16x32xf32> to vector<8x16xf32>
    %234 = vector.extract_strided_slice %212 {offsets = [0, 16], sizes = [8, 16], strides = [1, 1]} : vector<16x32xf32> to vector<8x16xf32>
    %cst_83 = arith.constant dense<0.000000e+00> : vector<8x8xf32>
    %235 = tpu.matmul %232, %233, %cst_83 {dimension_numbers = #tpu.dot_dimension_numbers<[1], [1], [0], [0], [0, 0, 1, 0], [], []>} : vector<8x16xf32>, vector<8x16xf32>, vector<8x8xf32> -> vector<8x8xf32>
    %cst_84 = arith.constant 2.500000e-01 : f32
    %236 = vector.broadcast %cst_84 : f32 to vector<8x8xf32>
    %237 = arith.mulf %235, %236 : vector<8x8xf32>
    %238 = vector.broadcast %29 : vector<1x8xf32> to vector<8x8xf32>
    %239 = arith.addf %237, %238 : vector<8x8xf32>
    %cst_85 = arith.constant dense<0xFF800000> : vector<8xf32>
    %240 = vector.multi_reduction <maximumf>, %239, %cst_85 [1] : vector<8x8xf32> to vector<8xf32>
    %241 = vector.shape_cast %240 : vector<8xf32> to vector<8x1xf32>
    %242 = vector.broadcast %241 : vector<8x1xf32> to vector<8x8xf32>
    %243 = arith.subf %239, %242 : vector<8x8xf32>
    %244 = math.exp %243 : vector<8x8xf32>
    %cst_86 = arith.constant dense<0.000000e+00> : vector<8xf32>
    %245 = vector.multi_reduction <add>, %244, %cst_86 [1] : vector<8x8xf32> to vector<8xf32>
    %246 = vector.shape_cast %245 : vector<8xf32> to vector<8x1xf32>
    %247 = tpu.reciprocal %246 {approx = true} : vector<8x1xf32> -> vector<8x1xf32>
    %248 = vector.broadcast %247 : vector<8x1xf32> to vector<8x8xf32>
    %249 = arith.mulf %244, %248 : vector<8x8xf32>
    %cst_87 = arith.constant dense<0.000000e+00> : vector<8x16xf32>
    %250 = tpu.matmul %249, %234, %cst_87 {dimension_numbers = #tpu.dot_dimension_numbers<[1], [0], [0], [1], [0, 0, 1, 1], [], []>} : vector<8x8xf32>, vector<8x16xf32>, vector<8x16xf32> -> vector<8x16xf32>
    %251 = tpu.concatenate %231, %250 in 1 : vector<8x16xf32>, vector<8x16xf32> -> vector<8x32xf32>
    %252 = vector.extract_strided_slice %210 {offsets = [8, 0], sizes = [8, 16], strides = [1, 1]} : vector<16x32xf32> to vector<8x16xf32>
    %253 = vector.extract_strided_slice %211 {offsets = [8, 0], sizes = [8, 16], strides = [1, 1]} : vector<16x32xf32> to vector<8x16xf32>
    %254 = vector.extract_strided_slice %212 {offsets = [8, 0], sizes = [8, 16], strides = [1, 1]} : vector<16x32xf32> to vector<8x16xf32>
    %cst_88 = arith.constant dense<0.000000e+00> : vector<8x8xf32>
    %255 = tpu.matmul %252, %253, %cst_88 {dimension_numbers = #tpu.dot_dimension_numbers<[1], [1], [0], [0], [0, 0, 1, 0], [], []>} : vector<8x16xf32>, vector<8x16xf32>, vector<8x8xf32> -> vector<8x8xf32>
    %cst_89 = arith.constant 2.500000e-01 : f32
    %256 = vector.broadcast %cst_89 : f32 to vector<8x8xf32>
    %257 = arith.mulf %255, %256 : vector<8x8xf32>
    %258 = vector.broadcast %30 : vector<1x8xf32> to vector<8x8xf32>
    %259 = arith.addf %257, %258 : vector<8x8xf32>
    %cst_90 = arith.constant dense<0xFF800000> : vector<8xf32>
    %260 = vector.multi_reduction <maximumf>, %259, %cst_90 [1] : vector<8x8xf32> to vector<8xf32>
    %261 = vector.shape_cast %260 : vector<8xf32> to vector<8x1xf32>
    %262 = vector.broadcast %261 : vector<8x1xf32> to vector<8x8xf32>
    %263 = arith.subf %259, %262 : vector<8x8xf32>
    %264 = math.exp %263 : vector<8x8xf32>
    %cst_91 = arith.constant dense<0.000000e+00> : vector<8xf32>
    %265 = vector.multi_reduction <add>, %264, %cst_91 [1] : vector<8x8xf32> to vector<8xf32>
    %266 = vector.shape_cast %265 : vector<8xf32> to vector<8x1xf32>
    %267 = tpu.reciprocal %266 {approx = true} : vector<8x1xf32> -> vector<8x1xf32>
    %268 = vector.broadcast %267 : vector<8x1xf32> to vector<8x8xf32>
    %269 = arith.mulf %264, %268 : vector<8x8xf32>
    %cst_92 = arith.constant dense<0.000000e+00> : vector<8x16xf32>
    %270 = tpu.matmul %269, %254, %cst_92 {dimension_numbers = #tpu.dot_dimension_numbers<[1], [0], [0], [1], [0, 0, 1, 1], [], []>} : vector<8x8xf32>, vector<8x16xf32>, vector<8x16xf32> -> vector<8x16xf32>
    %271 = vector.extract_strided_slice %210 {offsets = [8, 16], sizes = [8, 16], strides = [1, 1]} : vector<16x32xf32> to vector<8x16xf32>
    %272 = vector.extract_strided_slice %211 {offsets = [8, 16], sizes = [8, 16], strides = [1, 1]} : vector<16x32xf32> to vector<8x16xf32>
    %273 = vector.extract_strided_slice %212 {offsets = [8, 16], sizes = [8, 16], strides = [1, 1]} : vector<16x32xf32> to vector<8x16xf32>
    %cst_93 = arith.constant dense<0.000000e+00> : vector<8x8xf32>
    %274 = tpu.matmul %271, %272, %cst_93 {dimension_numbers = #tpu.dot_dimension_numbers<[1], [1], [0], [0], [0, 0, 1, 0], [], []>} : vector<8x16xf32>, vector<8x16xf32>, vector<8x8xf32> -> vector<8x8xf32>
    %cst_94 = arith.constant 2.500000e-01 : f32
    %275 = vector.broadcast %cst_94 : f32 to vector<8x8xf32>
    %276 = arith.mulf %274, %275 : vector<8x8xf32>
    %277 = vector.broadcast %30 : vector<1x8xf32> to vector<8x8xf32>
    %278 = arith.addf %276, %277 : vector<8x8xf32>
    %cst_95 = arith.constant dense<0xFF800000> : vector<8xf32>
    %279 = vector.multi_reduction <maximumf>, %278, %cst_95 [1] : vector<8x8xf32> to vector<8xf32>
    %280 = vector.shape_cast %279 : vector<8xf32> to vector<8x1xf32>
    %281 = vector.broadcast %280 : vector<8x1xf32> to vector<8x8xf32>
    %282 = arith.subf %278, %281 : vector<8x8xf32>
    %283 = math.exp %282 : vector<8x8xf32>
    %cst_96 = arith.constant dense<0.000000e+00> : vector<8xf32>
    %284 = vector.multi_reduction <add>, %283, %cst_96 [1] : vector<8x8xf32> to vector<8xf32>
    %285 = vector.shape_cast %284 : vector<8xf32> to vector<8x1xf32>
    %286 = tpu.reciprocal %285 {approx = true} : vector<8x1xf32> -> vector<8x1xf32>
    %287 = vector.broadcast %286 : vector<8x1xf32> to vector<8x8xf32>
    %288 = arith.mulf %283, %287 : vector<8x8xf32>
    %cst_97 = arith.constant dense<0.000000e+00> : vector<8x16xf32>
    %289 = tpu.matmul %288, %273, %cst_97 {dimension_numbers = #tpu.dot_dimension_numbers<[1], [0], [0], [1], [0, 0, 1, 1], [], []>} : vector<8x8xf32>, vector<8x16xf32>, vector<8x16xf32> -> vector<8x16xf32>
    %290 = tpu.concatenate %270, %289 in 1 : vector<8x16xf32>, vector<8x16xf32> -> vector<8x32xf32>
    %291 = tpu.concatenate %251, %290 in 0 : vector<8x32xf32>, vector<8x32xf32> -> vector<16x32xf32>
    %c1_98 = arith.constant 1 : index
    %c0_99 = arith.constant 0 : index
    %c0_100 = arith.constant 0 : index
    %292 = vector.load %arg5[%c1_98, %c0_99, %c0_100] : memref<2x32x32xf32, #tpu.memory_space<vmem>>, vector<1x32x32xf32>
    %293 = vector.shape_cast %292 : vector<1x32x32xf32> to vector<32x32xf32>
    %cst_101 = arith.constant dense<0.000000e+00> : vector<16x32xf32>
    %294 = tpu.matmul %291, %293, %cst_101 {dimension_numbers = #tpu.dot_dimension_numbers<[1], [0], [0], [1], [0, 0, 1, 1], [], []>} : vector<16x32xf32>, vector<32x32xf32>, vector<16x32xf32> -> vector<16x32xf32>
    %295 = vector.broadcast %197 : vector<1x32xf32> to vector<16x32xf32>
    %296 = arith.addf %294, %295 : vector<16x32xf32>
    %297 = arith.addf %194, %296 : vector<16x32xf32>
    %cst_102 = arith.constant dense<0.000000e+00> : vector<16xf32>
    %298 = vector.multi_reduction <add>, %297, %cst_102 [1] : vector<16x32xf32> to vector<16xf32>
    %299 = vector.shape_cast %298 : vector<16xf32> to vector<16x1xf32>
    %cst_103 = arith.constant 3.200000e+01 : f32
    %300 = vector.broadcast %cst_103 : f32 to vector<16x1xf32>
    %301 = arith.divf %299, %300 : vector<16x1xf32>
    %302 = vector.broadcast %301 : vector<16x1xf32> to vector<16x32xf32>
    %303 = arith.subf %297, %302 : vector<16x32xf32>
    %304 = arith.mulf %303, %303 : vector<16x32xf32>
    %cst_104 = arith.constant dense<0.000000e+00> : vector<16xf32>
    %305 = vector.multi_reduction <add>, %304, %cst_104 [1] : vector<16x32xf32> to vector<16xf32>
    %306 = vector.shape_cast %305 : vector<16xf32> to vector<16x1xf32>
    %cst_105 = arith.constant 3.200000e+01 : f32
    %307 = vector.broadcast %cst_105 : f32 to vector<16x1xf32>
    %308 = arith.divf %306, %307 : vector<16x1xf32>
    %cst_106 = arith.constant 9.99999996E-13 : f32
    %309 = vector.broadcast %cst_106 : f32 to vector<16x1xf32>
    %310 = arith.addf %308, %309 : vector<16x1xf32>
    %311 = math.rsqrt %310 : vector<16x1xf32>
    %312 = vector.broadcast %311 : vector<16x1xf32> to vector<16x32xf32>
    %313 = arith.mulf %303, %312 : vector<16x32xf32>
    %314 = vector.broadcast %198 : vector<1x32xf32> to vector<16x32xf32>
    %315 = arith.mulf %313, %314 : vector<16x32xf32>
    %316 = vector.broadcast %199 : vector<1x32xf32> to vector<16x32xf32>
    %317 = arith.addf %315, %316 : vector<16x32xf32>
    %c1_107 = arith.constant 1 : index
    %c0_108 = arith.constant 0 : index
    %c0_109 = arith.constant 0 : index
    %318 = vector.load %arg7[%c1_107, %c0_108, %c0_109] : memref<2x32x64xf32, #tpu.memory_space<vmem>>, vector<1x32x64xf32>
    %319 = vector.shape_cast %318 : vector<1x32x64xf32> to vector<32x64xf32>
    %cst_110 = arith.constant dense<0.000000e+00> : vector<16x64xf32>
    %320 = tpu.matmul %317, %319, %cst_110 {dimension_numbers = #tpu.dot_dimension_numbers<[1], [0], [0], [1], [0, 0, 1, 1], [], []>} : vector<16x32xf32>, vector<32x64xf32>, vector<16x64xf32> -> vector<16x64xf32>
    %c1_111 = arith.constant 1 : index
    %c0_112 = arith.constant 0 : index
    %c0_113 = arith.constant 0 : index
    %321 = vector.load %arg8[%c1_111, %c0_112, %c0_113] : memref<2x1x64xf32, #tpu.memory_space<vmem>>, vector<1x1x64xf32>
    %322 = vector.shape_cast %321 : vector<1x1x64xf32> to vector<1x64xf32>
    %323 = vector.broadcast %322 : vector<1x64xf32> to vector<16x64xf32>
    %324 = arith.addf %320, %323 : vector<16x64xf32>
    %cst_114 = arith.constant 5.000000e-01 : f32
    %325 = vector.broadcast %cst_114 : f32 to vector<16x64xf32>
    %326 = arith.mulf %325, %324 : vector<16x64xf32>
    %cst_115 = arith.constant 1.41421354 : f32
    %327 = vector.broadcast %cst_115 : f32 to vector<16x64xf32>
    %328 = arith.divf %324, %327 : vector<16x64xf32>
    %329 = math.erf %328 : vector<16x64xf32>
    %cst_116 = arith.constant 1.000000e+00 : f32
    %330 = vector.broadcast %cst_116 : f32 to vector<16x64xf32>
    %331 = arith.addf %330, %329 : vector<16x64xf32>
    %332 = arith.mulf %326, %331 : vector<16x64xf32>
    %c1_117 = arith.constant 1 : index
    %c0_118 = arith.constant 0 : index
    %c0_119 = arith.constant 0 : index
    %333 = vector.load %arg9[%c1_117, %c0_118, %c0_119] : memref<2x64x32xf32, #tpu.memory_space<vmem>>, vector<1x64x32xf32>
    %334 = vector.shape_cast %333 : vector<1x64x32xf32> to vector<64x32xf32>
    %cst_120 = arith.constant dense<0.000000e+00> : vector<16x32xf32>
    %335 = tpu.matmul %332, %334, %cst_120 {dimension_numbers = #tpu.dot_dimension_numbers<[1], [0], [0], [1], [0, 0, 1, 1], [], []>} : vector<16x64xf32>, vector<64x32xf32>, vector<16x32xf32> -> vector<16x32xf32>
    %336 = vector.broadcast %200 : vector<1x32xf32> to vector<16x32xf32>
    %337 = arith.addf %335, %336 : vector<16x32xf32>
    %338 = arith.addf %317, %337 : vector<16x32xf32>
    %cst_121 = arith.constant dense<0.000000e+00> : vector<16xf32>
    %339 = vector.multi_reduction <add>, %338, %cst_121 [1] : vector<16x32xf32> to vector<16xf32>
    %340 = vector.shape_cast %339 : vector<16xf32> to vector<16x1xf32>
    %cst_122 = arith.constant 3.200000e+01 : f32
    %341 = vector.broadcast %cst_122 : f32 to vector<16x1xf32>
    %342 = arith.divf %340, %341 : vector<16x1xf32>
    %343 = vector.broadcast %342 : vector<16x1xf32> to vector<16x32xf32>
    %344 = arith.subf %338, %343 : vector<16x32xf32>
    %345 = arith.mulf %344, %344 : vector<16x32xf32>
    %cst_123 = arith.constant dense<0.000000e+00> : vector<16xf32>
    %346 = vector.multi_reduction <add>, %345, %cst_123 [1] : vector<16x32xf32> to vector<16xf32>
    %347 = vector.shape_cast %346 : vector<16xf32> to vector<16x1xf32>
    %cst_124 = arith.constant 3.200000e+01 : f32
    %348 = vector.broadcast %cst_124 : f32 to vector<16x1xf32>
    %349 = arith.divf %347, %348 : vector<16x1xf32>
    %cst_125 = arith.constant 9.99999996E-13 : f32
    %350 = vector.broadcast %cst_125 : f32 to vector<16x1xf32>
    %351 = arith.addf %349, %350 : vector<16x1xf32>
    %352 = math.rsqrt %351 : vector<16x1xf32>
    %353 = vector.broadcast %352 : vector<16x1xf32> to vector<16x32xf32>
    %354 = arith.mulf %344, %353 : vector<16x32xf32>
    %355 = vector.broadcast %201 : vector<1x32xf32> to vector<16x32xf32>
    %356 = arith.mulf %354, %355 : vector<16x32xf32>
    %357 = vector.broadcast %202 : vector<1x32xf32> to vector<16x32xf32>
    %358 = arith.addf %356, %357 : vector<16x32xf32>
    %359 = vector.extract_strided_slice %358 {offsets = [0, 0], sizes = [1, 32], strides = [1, 1]} : vector<16x32xf32> to vector<1x32xf32>
    %360 = vector.extract_strided_slice %358 {offsets = [8, 0], sizes = [1, 32], strides = [1, 1]} : vector<16x32xf32> to vector<1x32xf32>
    %361 = tpu.concatenate %359, %360 in 0 : vector<1x32xf32>, vector<1x32xf32> -> vector<2x32xf32>
    %c0_126 = arith.constant 0 : index
    %c0_127 = arith.constant 0 : index
    %362 = vector.load %arg10[%c0_126, %c0_127] : memref<32x32xf32, #tpu.memory_space<vmem>>, vector<32x32xf32>
    %cst_128 = arith.constant dense<0.000000e+00> : vector<2x32xf32>
    %363 = tpu.matmul %361, %362, %cst_128 {dimension_numbers = #tpu.dot_dimension_numbers<[1], [0], [0], [1], [0, 0, 1, 1], [], []>} : vector<2x32xf32>, vector<32x32xf32>, vector<2x32xf32> -> vector<2x32xf32>
    %364 = vector.extract_strided_slice %0 {offsets = [2, 0], sizes = [1, 32], strides = [1, 1]} : vector<3x32xf32> to vector<1x32xf32>
    %365 = vector.broadcast %364 : vector<1x32xf32> to vector<2x32xf32>
    %366 = arith.addf %363, %365 : vector<2x32xf32>
    %367 = math.tanh %366 : vector<2x32xf32>
    %c0_129 = arith.constant 0 : index
    %c0_130 = arith.constant 0 : index
    %368 = vector.load %arg11[%c0_129, %c0_130] : memref<32x3xf32, #tpu.memory_space<vmem>>, vector<32x3xf32>
    %cst_131 = arith.constant dense<0.000000e+00> : vector<2x3xf32>
    %369 = tpu.matmul %367, %368, %cst_131 {dimension_numbers = #tpu.dot_dimension_numbers<[1], [0], [0], [1], [0, 0, 1, 1], [], []>} : vector<2x32xf32>, vector<32x3xf32>, vector<2x3xf32> -> vector<2x3xf32>
    %c0_132 = arith.constant 0 : index
    %c0_133 = arith.constant 0 : index
    %370 = vector.load %arg12[%c0_132, %c0_133] : memref<1x3xf32, #tpu.memory_space<vmem>>, vector<1x3xf32>
    %371 = vector.broadcast %370 : vector<1x3xf32> to vector<2x3xf32>
    %372 = arith.addf %369, %371 : vector<2x3xf32>
    %cst_134 = arith.constant 5.000000e-01 : f32
    %373 = vector.broadcast %cst_134 : f32 to vector<2x3xf32>
    %374 = arith.mulf %373, %372 : vector<2x3xf32>
    %cst_135 = arith.constant 1.41421354 : f32
    %375 = vector.broadcast %cst_135 : f32 to vector<2x3xf32>
    %376 = arith.divf %372, %375 : vector<2x3xf32>
    %377 = math.erf %376 : vector<2x3xf32>
    %cst_136 = arith.constant 1.000000e+00 : f32
    %378 = vector.broadcast %cst_136 : f32 to vector<2x3xf32>
    %379 = arith.addf %378, %377 : vector<2x3xf32>
    %380 = arith.mulf %374, %379 : vector<2x3xf32>
    %cst_137 = arith.constant dense<0xFF800000> : vector<2xf32>
    %381 = vector.multi_reduction <maximumf>, %380, %cst_137 [1] : vector<2x3xf32> to vector<2xf32>
    %382 = vector.shape_cast %381 : vector<2xf32> to vector<2x1xf32>
    %383 = vector.broadcast %382 : vector<2x1xf32> to vector<2x3xf32>
    %384 = arith.subf %380, %383 : vector<2x3xf32>
    %385 = math.exp %384 : vector<2x3xf32>
    %cst_138 = arith.constant dense<0.000000e+00> : vector<2xf32>
    %386 = vector.multi_reduction <add>, %385, %cst_138 [1] : vector<2x3xf32> to vector<2xf32>
    %387 = vector.shape_cast %386 : vector<2xf32> to vector<2x1xf32>
    %388 = vector.broadcast %387 : vector<2x1xf32> to vector<2x3xf32>
    %389 = arith.divf %385, %388 : vector<2x3xf32>
    %c0_139 = arith.constant 0 : index
    %c0_140 = arith.constant 0 : index
    %390 = vector.load %arg13[%c0_139, %c0_140] : memref<2x3xf32, #tpu.memory_space<vmem>>, vector<2x3xf32>
    tpu.vector_store %arg13[%c0_139, %c0_140], %389 {strides = array<i32>} : memref<2x3xf32, #tpu.memory_space<vmem>>, vector<2x3xf32>,
    return
  }
}

</mosaic_0001>

<bundles_post_ra>
// kernel: bert_sentiment_forward.1
= control target key start
LH: loop header
LB: loop body
LE: loop exit
PB: predicated region body
PF: predicated region fallthrough
CT: control target
= control target key end

     0   :  { %vm48_vm0 = vcmask 261120   ;;  %s2208_s0 = inlined_call_operand.vmem [shape: f32[16,32], index: 0, kind: input, shape index: {}]   ;;  %s2209_s1 = inlined_call_operand.vmem [shape: f32[2,8], index: 1, kind: input, shape index: {}]   ;;  %s2210_s2 = inlined_call_operand.vmem [shape: f32[3,32], index: 2, kind: input, shape index: {}]   ;;  %s2211_s3 = inlined_call_operand.vmem [shape: f32[2,32,96], index: 3, kind: input, shape index: {}]   ;;  %s2212_s4 = inlined_call_operand.vmem [shape: f32[2,1,96], index: 4, kind: input, shape index: {}]   ;;  %s2213_s5 = inlined_call_operand.vmem [shape: f32[2,32,32], index: 5, kind: input, shape index: {}]   ;;  %s2214_s6 = inlined_call_operand.vmem [shape: f32[2,6,32], index: 6, kind: input, shape index: {}]   ;;  %s2215_s7 = inlined_call_operand.vmem [shape: f32[2,32,64], index: 7, kind: input, shape index: {}]   ;;  %s2216_s8 = inlined_call_operand.vmem [shape: f32[2,1,64], index: 8, kind: input, shape index: {}]   ;;  %s2217_s9 = inlined_call_operand.vmem [shape: f32[2,64,32], index: 9, kind: input, shape index: {}]   ;;  %s2218_s10 = inlined_call_operand.vmem [shape: f32[32,32], index: 10, kind: input, shape index: {}]   ;;  %s2219_s11 = inlined_call_operand.vmem [shape: f32[32,3], index: 11, kind: input, shape index: {}]   ;;  %s2220_s12 = inlined_call_operand.vmem [shape: f32[1,3], index: 12, kind: input, shape index: {}]   ;;  %s2221_s13 = inlined_call_operand.hbm [shape: f32[2,3], index: 13, kind: output, shape index: {}]  }
   0x1   :  { %v46_v0 = vld [vmem:[%s2208_s0] sm:$0xff]  ;;  %v47_v1 = vld [vmem:[%s2208_s0 + $0x8] sm:$0xff] }
   0x2   :  { %v49_v2 = vsel %vm48_vm0, %v46_v0, 0.0  ;;  %v52_v3 = vsel %vm48_vm0, %v47_v1, 0.0 }
   0x3   :  { %50 = vadd.xlane.f32.xlu0 %v49_v2  ;;  %53 = vadd.xlane.f32.xlu1 %v52_v3 }
   0x4   :  { %18 = vsyncpa [#allocation3], 0  ;;  %v1692_v4 = vmov 32.0   ;;  %v113_v21 = vld [vmem:[%s2211_s3 + $0x18] sm:$0xff]  ;;  %v112_v22 = vld [vmem:[%s2211_s3 + $0x10] sm:$0xff]  ;;  %s1693_s23 = smov 112  }
   0x5   :  { %1593 = vrcp.f32 %v1692_v4  ;;  %136 = vmatpush.msra.mxu0 %v113_v21  ;;  %v111_v23 = vld [vmem:[%s2211_s3 + $0x8] sm:$0xff]  ;;  %v110_v24 = vld [vmem:[%s2211_s3] sm:$0xff]  ;;  %s1694_s24 = smov 96   ;;  %s1695_s25 = smov 80   ;;  %vm150_vm8 = vcmask 130048   ;;  %vm178_vm9 = vcmask 64512  }
   0x6   :  { %v45_v40 = vld [vmem:[%s2210_s2] sm:$0x7]  ;;  %s1697_s28 = smov 48   ;;  %s1698_s0 = smov 16  }
   0x7   :  { %137 = vmatpush.msra.mxu0 %v112_v22  ;;  %v100_v43 = vperm.slane %v45_v40, 0  ;;  %v103_v47 = vperm.slane %v45_v40, 1  ;;  %v1588_v54 = vld [vmem:[%s2212_s4] ss:$0 sm:$0xff]  ;;  %s1500_s18 = sshll.u32 %s2221_s13, 4  ;;  %s1501_s18 = int_to_ptr.hbm [resolvable:$true] %s1500_s18 }
   0x8   :  { %v106_v60 = vld [vmem:[%s2209_s1] sm:$0x3]  ;;  %s1696_s1 = smov 64  }
   0x9   :  { %138 = vmatpush.msra.mxu0 %v111_v23  ;;  %v107_v61 = vsub.f32 1.0, %v106_v60 }
   0xb   :  { %v1594_v5 = vpop.eup %1593  ;;  %139 = vmatpush.msra.mxu0 %v110_v24  ;;  %v108_v63 = vmul.f32 -1e+09, %v107_v61 }
   0xc   :  { %v56_v6 = vmul.f32 32.0, %v1594_v5  ;;  %vm60_vm1 = vweird.f32 %v1594_v5 }
   0xe   :  { %v57_v7 = vsub.f32 1.0, %v56_v6 }
  0x10   :  { %v58_v8 = vmul.f32 %v1594_v5, %v57_v7 }
  0x12   :  { %v59_v9 = vadd.f32 %v1594_v5, %v58_v8 }
  0x14   :  { %v1779_v10 = vsel %vm60_vm1, %v1594_v5, %v59_v9 }
  0x76   :  { %v51_v11 = vpop.xlane.xlu0 %50  ;;  %v54_v12 = vpop.xlane.xlu1 %53 }
  0x77   :  { %v62_v13 = vmul.f32 %v1779_v10, %v51_v11  ;;  %v63_v14 = vmul.f32 %v1779_v10, %v54_v12 }
  0x79   :  { %v64_v15 = vsub.f32 %v46_v0, %v62_v13  ;;  %v65_v16 = vsub.f32 %v47_v1, %v63_v14  ;;  %v1823_v0 = vperm.slane %v108_v63, 0 }
  0x7b   :  { %v66_v17 = vmul.f32 %v64_v15, %v64_v15  ;;  %v67_v18 = vmul.f32 %v65_v16, %v65_v16 }
  0x7d   :  { %v68_v19 = vsel %vm48_vm0, %v66_v17, 0.0  ;;  %v71_v20 = vsel %vm48_vm0, %v67_v18, 0.0 }
  0x7e   :  { %69 = vadd.xlane.f32.xlu0 %v68_v19  ;;  %72 = vadd.xlane.f32.xlu1 %v71_v20 }
  0xf1   :  { %v70_v25 = vpop.xlane.xlu0 %69  ;;  %v73_v26 = vpop.xlane.xlu1 %72 }
  0xf2   :  { %v74_v27 = vmul.f32 %v70_v25, %v1779_v10  ;;  %v75_v28 = vmul.f32 %v73_v26, %v1779_v10 }
  0xf4   :  { %v76_v29 = vadd.f32 1e-12, %v74_v27  ;;  %v77_v30 = vadd.f32 1e-12, %v75_v28  ;;  %v1846_v28 = vperm.slane %v108_v63, 1 }
  0xf6   :  { %1595 = vrsqrt.f32 %v76_v29  ;;  %vm94_vm2 = vweird.f32 %v77_v30  ;;  %vm84_vm5 = vweird.f32 %v76_v29 }
  0xf7   :  { %1597 = vrsqrt.f32 %v77_v30 }
  0xfc   :  { %v1596_v31 = vpop.eup %1595 }
  0xfd   :  { %v1598_v32 = vpop.eup %1597  ;;  %v79_v33 = vmul.f32 %v1596_v31, %v76_v29  ;;  %vm85_vm4 = vweird.f32 %v1596_v31 }
  0xfe   :  { %v89_v34 = vmul.f32 %v1598_v32, %v77_v30  ;;  %vm95_vm3 = vweird.f32 %v1598_v32  ;;  %vm86_vm7 = vmor %vm84_vm5, %vm85_vm4 }
  0xff   :  { %v80_v35 = vmul.f32 %v1596_v31, %v79_v33  ;;  %vm96_vm6 = vmor %vm94_vm2, %vm95_vm3  ;;  %vm654_vm3 = vcmask 523264  }
 0x100   :  { %v90_v36 = vmul.f32 %v1598_v32, %v89_v34 }
 0x101   :  { %v81_v37 = vmul.f32 0.5, %v80_v35 }
 0x102   :  { %v91_v38 = vmul.f32 0.5, %v90_v36 }
 0x103   :  { %v82_v39 = vsub.f32 1.5, %v81_v37 }
 0x104   :  { %v92_v41 = vsub.f32 1.5, %v91_v38 }
 0x105   :  { %v83_v42 = vmul.f32 %v1596_v31, %v82_v39 }
 0x106   :  { %v93_v44 = vmul.f32 %v1598_v32, %v92_v41 }
 0x107   :  { %v87_v45 = vsel %vm86_vm7, %v1596_v31, %v83_v42 }
 0x108   :  { %v98_v46 = vmul.f32 %v87_v45, %v64_v15  ;;  %v97_v48 = vsel %vm96_vm6, %v1598_v32, %v93_v44 }
 0x109   :  { %v99_v50 = vmul.f32 %v97_v48, %v65_v16 }
 0x10a   :  { %v101_v49 = vmul.f32 %v100_v43, %v98_v46 }
 0x10b   :  { %v102_v52 = vmul.f32 %v100_v43, %v99_v50  ;;  %v429_v50 = vld [vmem:[%s2213_s5 + $0x10] sm:$0xff] }
 0x10c   :  { %v1802_v51 = vadd.f32 %v103_v47, %v101_v49  ;;  %v430_v49 = vld [vmem:[%s2213_s5 + $0x18] sm:$0xff] }
 0x10d   :  { %v1806_v53 = vadd.f32 %v103_v47, %v102_v52  ;;  %v428_v52 = vld [vmem:[%s2213_s5 + $0x8] sm:$0xff] }
 0x10e   :  { %1509 = vmatmul.msk.f32.vlgmr.msra.gmra.mxu0 %vm48_vm0, %v1802_v51 }
 0x116   :  { %1510 = vmatmul.msk.f32.gmra.mxu0 %vm48_vm0, %v1806_v53 }
 0x18b   :  { %v141_v55 = vpop.f32.mrf.mxu0 }
 0x18c   :  { %v142_v56 = vadd.f32 %v1588_v54, %v141_v55 }
 0x18e   :  { %216 = vrot.lane.b32.xlu0 %v142_v56, %s1693_s23  ;;  %148 = vrot.lane.b32.xlu2 %v142_v56, %s1694_s24 }
 0x193   :  { %v144_v62 = vpop.f32.mrf.mxu0 }
 0x194   :  { %v1827_v7 = vadd.f32 %v1588_v54, %v144_v62  ;;  %v427_v54 = vld [vmem:[%s2213_s5] sm:$0xff] }
 0x196   :  { %218 = vrot.lane.b32.xlu2 %v142_v56, %s1695_s25 }
 0x1e8   :  { %v149_v57 = vpop.permute.xlu2 %148 }
 0x1e9   :  { %1511 = vmatpush.xpose.msk.msrb.mxu0 %vm150_vm8, %v149_v57 }
 0x1ec   :  { %1512 = vmatmul.msk.f32.vlgmr.msrb.gmra.mxu0 %vm150_vm8, %v142_v56 }
 0x1f0   :  { %v219_v58 = vpop.permute.xlu2 %218 }
 0x1f1   :  { %1514 = vmatpush.xpose.msk.msra.mxu3 %vm150_vm8, %v219_v58 }
 0x200   :  { %v217_v59 = vpop.permute.xlu0 %216 }
 0x201   :  { %1515 = vmatmul.msk.f32.vlgmr.msra.gmra.mxu3 %vm150_vm8, %v217_v59 }
 0x269   :  { %v172_v1 = vpop.f32.mrf.mxu0 }
 0x26a   :  { %v175_v2 = vmul.f32 0.25, %v172_v1 }
 0x26c   :  { %v177_v3 = vadd.f32 %v1823_v0, %v175_v2 }
 0x26e   :  { %v179_v4 = vsel %vm178_vm9, %v177_v3, -inf }
 0x26f   :  { %180 = vmax.xlane.f32.xlu1 %v179_v4  ;;  %v1879_v4 = vld [vmem:[%s2214_s6] sm:$0x3f] }
 0x284   :  { %v241_v5 = vpop.f32.mrf.mxu3 }
 0x285   :  { %v244_v6 = vmul.f32 0.25, %v241_v5  ;;  %v431_v5 = vperm.slane %v1879_v4, 0 }
 0x287   :  { %v245_v8 = vadd.f32 %v244_v6, %v1823_v0 }
 0x288   :  { %289 = vrot.lane.b32.xlu1 %v1827_v7, %s1694_s24 }
 0x289   :  { %v246_v9 = vsel %vm178_vm9, %v245_v8, -inf }
 0x28a   :  { %247 = vmax.xlane.f32.xlu2 %v246_v9 }
 0x2a2   :  { %190 = vrot.lane.b32.xlu2 %v142_v56, %s1696_s1 }
 0x2aa   :  { %357 = vrot.lane.b32.xlu2 %v1827_v7, %s1695_s25 }
 0x2b2   :  { %355 = vrot.lane.b32.xlu2 %v1827_v7, %s1693_s23 }
 0x2e2   :  { %v181_v11 = vpop.xlane.xlu1 %180 }
 0x2e3   :  { %v182_v12 = vsub.f32 %v177_v3, %v181_v11 }
 0x2e5   :  { %v183_v13 = vmul.f32 1.442695, %v182_v12 }
 0x2e7   :  { %1599 = vpow2.f32 %v183_v13 }
 0x2ed   :  { %v1600_v14 = vpop.eup %1599 }
 0x2ee   :  { %v185_v15 = vsel %vm178_vm9, %v1600_v14, 0.0 }
 0x2ef   :  { %186 = vadd.xlane.f32.xlu0 %v185_v15 }
 0x2fa   :  { %v290_v16 = vpop.permute.xlu1 %289 }
 0x2fb   :  { %1517 = vmatpush.xpose.msk.msra.mxu1 %vm150_vm8, %v290_v16 }
 0x2fd   :  { %v248_v17 = vpop.xlane.xlu2 %247 }
 0x2fe   :  { %v249_v18 = vsub.f32 %v245_v8, %v248_v17  ;;  %1518 = vmatmul.msk.f32.vlgmr.msra.gmra.mxu1 %vm150_vm8, %v1827_v7 }
 0x300   :  { %v250_v19 = vmul.f32 1.442695, %v249_v18 }
 0x302   :  { %1601 = vpow2.f32 %v250_v19 }
 0x303   :  { %257 = vrot.lane.b32.xlu0 %v142_v56, %s1697_s28 }
 0x305   :  { %v191_v20 = vpop.permute.xlu2 %190 }
 0x306   :  { %211 = vmatpush.msra.mxu2 %v191_v20  ;;  %v515_v20 = vld [vmem:[%s2215_s7 + $0x10] sm:$0xff] }
 0x308   :  { %v1602_v21 = vpop.eup %1601 }
 0x309   :  { %v252_v22 = vsel %vm178_vm9, %v1602_v21, 0.0 }
 0x30a   :  { %253 = vadd.xlane.f32.xlu1 %v252_v22  ;;  %v513_v22 = vld [vmem:[%s2215_s7] sm:$0xff] }
 0x30d   :  { %v358_v27 = vpop.permute.xlu2 %357 }
 0x315   :  { %v356_v36 = vpop.permute.xlu2 %355 }
 0x362   :  { %v187_v23 = vpop.xlane.xlu0 %186 }
 0x363   :  { %1603 = vrcp.f32 %v187_v23 }
 0x369   :  { %v1604_v24 = vpop.eup %1603 }
 0x36a   :  { %v189_v25 = vmul.f32 %v1604_v24, %v1600_v14 }
 0x36c   :  { %1513 = vmatmul.msk.f32.vlgmr.msra.gmra.mxu2 %vm178_vm9, %v189_v25 }
 0x375   :  { %v258_v26 = vpop.permute.xlu0 %257 }
 0x376   :  { %278 = vmatpush.msrb.mxu2 %v258_v26 }
 0x378   :  { %1520 = vmatpush.xpose.msk.msra.mxu2 %vm150_vm8, %v358_v27 }
 0x37b   :  { %v312_v29 = vpop.f32.mrf.mxu1 }
 0x37c   :  { %v315_v30 = vmul.f32 0.25, %v312_v29 }
 0x37d   :  { %v254_v31 = vpop.xlane.xlu1 %253 }
 0x37e   :  { %1605 = vrcp.f32 %v254_v31  ;;  %v317_v32 = vadd.f32 %v1846_v28, %v315_v30 }
 0x380   :  { %v318_v33 = vsel %vm178_vm9, %v317_v32, -inf }
 0x381   :  { %319 = vmax.xlane.f32.xlu1 %v318_v33 }
 0x384   :  { %v1606_v34 = vpop.eup %1605 }
 0x385   :  { %v256_v35 = vmul.f32 %v1606_v34, %v1602_v21  ;;  %v514_v21 = vld [vmem:[%s2215_s7 + $0x8] sm:$0xff] }
 0x387   :  { %1516 = vmatmul.msk.f32.vlgmr.msrb.gmra.mxu2 %vm178_vm9, %v256_v35  ;;  %v507_v35 = vperm.slane %v1879_v4, 1 }
 0x38f   :  { %1521 = vmatmul.msk.f32.vlgmr.msra.gmra.mxu2 %vm150_vm8, %v356_v36 }
 0x39a   :  { %329 = vrot.lane.b32.xlu1 %v1827_v7, %s1696_s1 }
 0x3ef   :  { %v213_v42 = vpop.f32.mrf.mxu2 }
 0x3f4   :  { %v320_v37 = vpop.xlane.xlu1 %319 }
 0x3f5   :  { %v321_v38 = vsub.f32 %v317_v32, %v320_v37 }
 0x3f7   :  { %v322_v39 = vmul.f32 1.442695, %v321_v38  ;;  %v510_v38 = vperm.slane %v1879_v4, 2 }
 0x3f9   :  { %1607 = vpow2.f32 %v322_v39 }
 0x3ff   :  { %v1608_v40 = vpop.eup %1607 }
 0x400   :  { %v324_v41 = vsel %vm178_vm9, %v1608_v40, 0.0 }
 0x401   :  { %325 = vadd.xlane.f32.xlu0 %v324_v41  ;;  %v1699_v41 = vmov 1.4142135  }
 0x40a   :  { %v280_v43 = vpop.f32.mrf.mxu2 }
 0x40b   :  { %284 = vrot.lane.b32.xlu1 %v280_v43, %s1698_s0 }
 0x40c   :  { %v330_v44 = vpop.permute.xlu1 %329 }
 0x40d   :  { %350 = vmatpush.msrb.mxu3 %v330_v44 }
 0x40f   :  { %450 = vmatpush.msra.mxu3 %v430_v49 }
 0x411   :  { %451 = vmatpush.msra.mxu3 %v429_v50 }
 0x412   :  { %v380_v45 = vpop.f32.mrf.mxu2 }
 0x413   :  { %v383_v46 = vmul.f32 0.25, %v380_v45  ;;  %452 = vmatpush.msra.mxu3 %v428_v52  ;;  %v1921_v52 = vld [vmem:[%s2216_s8] ss:$0 sm:$0xff] }
 0x415   :  { %v384_v47 = vadd.f32 %v383_v46, %v1846_v28  ;;  %453 = vmatpush.msra.mxu3 %v427_v54 }
 0x417   :  { %v385_v48 = vsel %vm178_vm9, %v384_v47, -inf }
 0x418   :  { %386 = vmax.xlane.f32.xlu2 %v385_v48 }
 0x430   :  { %396 = vrot.lane.b32.xlu2 %v1827_v7, %s1697_s28 }
 0x474   :  { %v326_v55 = vpop.xlane.xlu0 %325 }
 0x475   :  { %1609 = vrcp.f32 %v326_v55 }
 0x47b   :  { %v1610_v56 = vpop.eup %1609 }
 0x47c   :  { %v328_v57 = vmul.f32 %v1610_v56, %v1608_v40 }
 0x47d   :  { %v285_v58 = vpop.permute.xlu1 %284 }
 0x47e   :  { %1519 = vmatmul.msk.f32.vlgmr.msrb.gmra.mxu3 %vm178_vm9, %v328_v57  ;;  %v287_v59 = vsel %vm150_vm8, %v213_v42, %v285_v58 }
 0x486   :  { %1523 = vmatmul.msk.f32.vlgmr.msra.gmra.mxu3 %vm48_vm0, %v287_v59  ;;  %v652_v59 = vld [vmem:[%s2217_s9 + $0x38] sm:$0xff] }
 0x487   :  { %669 = vmatpush.msrb.mxu2 %v652_v59 }
 0x48b   :  { %v387_v60 = vpop.xlane.xlu2 %386 }
 0x48c   :  { %v388_v61 = vsub.f32 %v384_v47, %v387_v60 }
 0x48e   :  { %v389_v62 = vmul.f32 1.442695, %v388_v61 }
 0x490   :  { %1611 = vpow2.f32 %v389_v62  ;;  %v651_v62 = vld [vmem:[%s2217_s9 + $0x30] sm:$0xff] }
 0x491   :  { %670 = vmatpush.msrb.mxu2 %v651_v62 }
 0x493   :  { %v397_v63 = vpop.permute.xlu2 %396 }
 0x494   :  { %417 = vmatpush.msrb.mxu1 %v397_v63 }
 0x496   :  { %v1612_v1 = vpop.eup %1611 }
 0x497   :  { %v391_v2 = vsel %vm178_vm9, %v1612_v1, 0.0 }
 0x498   :  { %392 = vadd.xlane.f32.xlu1 %v391_v2  ;;  %v650_v2 = vld [vmem:[%s2217_s9 + $0x28] sm:$0xff] }
 0x499   :  { %671 = vmatpush.msrb.mxu2 %v650_v2 }
 0x501   :  { %v352_v3 = vpop.f32.mrf.mxu3 }
 0x509   :  { %v455_v6 = vpop.f32.mrf.mxu3 }
 0x50a   :  { %v456_v7 = vadd.f32 %v455_v6, %v431_v5  ;;  %v649_v6 = vld [vmem:[%s2217_s9 + $0x20] sm:$0xff] }
 0x50b   :  { %v393_v8 = vpop.xlane.xlu1 %392  ;;  %672 = vmatpush.msrb.mxu2 %v649_v6 }
 0x50c   :  { %1613 = vrcp.f32 %v393_v8  ;;  %v461_v9 = vadd.f32 %v456_v7, %v1802_v51  ;;  %v516_v51 = vld [vmem:[%s2215_s7 + $0x18] sm:$0xff] }
 0x50d   :  { %539 = vmatpush.msra.mxu0 %v516_v51  ;;  %v648_v8 = vld [vmem:[%s2217_s9 + $0x18] sm:$0xff] }
 0x50e   :  { %v463_v11 = vsel %vm48_vm0, %v461_v9, 0.0  ;;  %673 = vmatpush.msrb.mxu2 %v648_v8 }
 0x50f   :  { %464 = vadd.xlane.f32.xlu0 %v463_v11  ;;  %540 = vmatpush.msra.mxu0 %v515_v20 }
 0x511   :  { %541 = vmatpush.msra.mxu0 %v514_v21 }
 0x512   :  { %v1614_v12 = vpop.eup %1613 }
 0x513   :  { %v395_v13 = vmul.f32 %v1614_v12, %v1612_v1  ;;  %542 = vmatpush.msra.mxu0 %v513_v22  ;;  %v647_v12 = vld [vmem:[%s2217_s9 + $0x10] sm:$0xff] }
 0x514   :  { %674 = vmatpush.msrb.mxu2 %v647_v12 }
 0x515   :  { %1522 = vmatmul.msk.f32.vlgmr.msrb.gmra.mxu1 %vm178_vm9, %v395_v13 }
 0x582   :  { %v465_v14 = vpop.xlane.xlu0 %464 }
 0x583   :  { %v469_v15 = vmul.f32 %v465_v14, %v1779_v10  ;;  %v646_v14 = vld [vmem:[%s2217_s9 + $0x8] sm:$0xff] }
 0x584   :  { %675 = vmatpush.msrb.mxu2 %v646_v14 }
 0x585   :  { %v471_v16 = vsub.f32 %v461_v9, %v469_v15 }
 0x587   :  { %v473_v17 = vmul.f32 %v471_v16, %v471_v16 }
 0x589   :  { %v475_v18 = vsel %vm48_vm0, %v473_v17, 0.0 }
 0x58a   :  { %476 = vadd.xlane.f32.xlu2 %v475_v18 }
 0x592   :  { %v419_v19 = vpop.f32.mrf.mxu1 }
 0x593   :  { %423 = vrot.lane.b32.xlu0 %v419_v19, %s1698_s0 }
 0x5fd   :  { %v477_v23 = vpop.xlane.xlu2 %476 }
 0x5fe   :  { %v481_v24 = vmul.f32 %v477_v23, %v1779_v10 }
 0x600   :  { %v483_v25 = vadd.f32 1e-12, %v481_v24 }
 0x602   :  { %1615 = vrsqrt.f32 %v483_v25  ;;  %vm491_vm11 = vweird.f32 %v483_v25 }
 0x603   :  { %1617 = vrcp.f32 %v1699_v41 }
 0x605   :  { %v424_v26 = vpop.permute.xlu0 %423 }
 0x606   :  { %v426_v27 = vsel %vm150_vm8, %v352_v3, %v424_v26 }
 0x607   :  { %1524 = vmatmul.msk.f32.gmra.mxu3 %vm48_vm0, %v426_v27 }
 0x608   :  { %v1616_v29 = vpop.eup %1615 }
 0x609   :  { %v486_v30 = vmul.f32 %v1616_v29, %v483_v25  ;;  %vm492_vm10 = vweird.f32 %v1616_v29  ;;  %v1618_v42 = vpop.eup %1617 }
 0x60a   :  { %vm493_vm12 = vmor %vm491_vm11, %vm492_vm10  ;;  %v553_v43 = vmul.f32 1.4142135, %v1618_v42  ;;  %vm557_vm13 = vweird.f32 %v1618_v42 }
 0x60b   :  { %v487_v31 = vmul.f32 %v1616_v29, %v486_v30 }
 0x60c   :  { %v554_v46 = vsub.f32 1.0, %v553_v43 }
 0x60d   :  { %v488_v32 = vmul.f32 0.5, %v487_v31 }
 0x60e   :  { %v555_v49 = vmul.f32 %v1618_v42, %v554_v46 }
 0x60f   :  { %v489_v33 = vsub.f32 1.5, %v488_v32 }
 0x610   :  { %v556_v50 = vadd.f32 %v1618_v42, %v555_v49 }
 0x611   :  { %v490_v34 = vmul.f32 %v1616_v29, %v489_v33 }
 0x612   :  { %v1923_v55 = vsel %vm557_vm13, %v1618_v42, %v556_v50 }
 0x613   :  { %v494_v36 = vsel %vm493_vm12, %v1616_v29, %v490_v34 }
 0x614   :  { %v505_v37 = vmul.f32 %v494_v36, %v471_v16  ;;  %v645_v16 = vld [vmem:[%s2217_s9] sm:$0xff] }
 0x615   :  { %676 = vmatpush.msrb.mxu2 %v645_v16 }
 0x616   :  { %v508_v39 = vmul.f32 %v507_v35, %v505_v37 }
 0x618   :  { %v1909_v40 = vadd.f32 %v510_v38, %v508_v39 }
 0x61a   :  { %1525 = vmatmul.msk.f32.vlgmr.msra.gmra.mxu0 %vm48_vm0, %v1909_v40 }
 0x68a   :  { %v458_v44 = vpop.f32.mrf.mxu3 }
 0x68b   :  { %v459_v45 = vadd.f32 %v458_v44, %v431_v5 }
 0x68d   :  { %v1914_v47 = vadd.f32 %v459_v45, %v1806_v53 }
 0x68f   :  { %v466_v48 = vsel %vm48_vm0, %v1914_v47, 0.0 }
 0x690   :  { %467 = vadd.xlane.f32.xlu0 %v466_v48 }
 0x697   :  { %v544_v54 = vpop.f32.mrf.mxu0 }
 0x698   :  { %v545_v56 = vadd.f32 %v1921_v52, %v544_v54  ;;  %v653_v54 = vperm.slane %v1879_v4, 3 }
 0x69a   :  { %v559_v53 = vmul.f32 %v1923_v55, %v545_v56  ;;  %v550_v42 = vmul.f32 0.5, %v545_v56 }
 0x69c   :  { %v561_v57 = vmul.f32 %v559_v53, %v559_v53 }
 0x69e   :  { %v562_v58 = vmin.f32 %v561_v57, 16.0 }
 0x6a0   :  { %v563_v60 = vmul.f32 2.1237322e-06, %v562_v58  ;;  %v574_v61 = vmul.f32 3.8918573e-05, %v562_v58 }
 0x6a2   :  { %v564_v63 = vadd.f32 0.00028619796, %v563_v60  ;;  %v575_v1 = vadd.f32 0.001143296, %v574_v61 }
 0x6a4   :  { %v565_v3 = vmul.f32 %v564_v63, %v562_v58  ;;  %v576_v5 = vmul.f32 %v575_v1, %v562_v58 }
 0x6a6   :  { %v577_v7 = vadd.f32 0.014752088, %v576_v5  ;;  %v566_v9 = vadd.f32 0.0036580483, %v565_v3 }
 0x6a8   :  { %v578_v11 = vmul.f32 %v577_v7, %v562_v58  ;;  %v567_v15 = vmul.f32 %v566_v9, %v562_v58 }
 0x6aa   :  { %v579_v13 = vadd.f32 0.112945676, %v578_v11  ;;  %v568_v19 = vadd.f32 0.05243302, %v567_v15 }
 0x6ac   :  { %v580_v17 = vmul.f32 %v579_v13, %v562_v58  ;;  %v569_v21 = vmul.f32 %v568_v19, %v562_v58 }
 0x6ae   :  { %v581_v18 = vadd.f32 0.4994258, %v580_v17  ;;  %v570_v22 = vadd.f32 0.18741608, %v569_v21 }
 0x6b0   :  { %v582_v51 = vmul.f32 %v581_v18, %v562_v58  ;;  %v571_v24 = vmul.f32 %v570_v22, %v562_v58 }
 0x6b2   :  { %v583_v20 = vadd.f32 1.0, %v582_v51  ;;  %v572_v29 = vadd.f32 1.1283791, %v571_v24 }
 0x6b4   :  { %1619 = vrcp.f32 %v583_v20  ;;  %v595_v27 = vand.u32 2147483648, %v583_v20  ;;  %v593_v31 = vand.u32 2147483647, %v583_v20  ;;  %vm589_vm15 = vweird.f32 %v583_v20 }
 0x6b5   :  { %v573_v34 = vmul.f32 %v572_v29, %v559_v53 }
 0x6b6   :  { %v596_v33 = vor.u32 1.1754944e-38, %v595_v27  ;;  %vm594_vm2 = vcmp.eq.f32.partialorder %v593_v31, 8.507059e+37 }
 0x6ba   :  { %v1620_v23 = vpop.eup %1619 }
 0x6bb   :  { %v585_v25 = vmul.f32 %v1620_v23, %v583_v20  ;;  %vm590_vm14 = vweird.f32 %v1620_v23 }
 0x6bc   :  { %vm591_vm1 = vmor %vm589_vm15, %vm590_vm14 }
 0x6bd   :  { %v586_v26 = vsub.f32 1.0, %v585_v25 }
 0x6bf   :  { %v587_v30 = vmul.f32 %v1620_v23, %v586_v26 }
 0x6c1   :  { %v588_v32 = vadd.f32 %v1620_v23, %v587_v30 }
 0x6c3   :  { %v592_v36 = vsel %vm591_vm1, %v1620_v23, %v588_v32 }
 0x6c4   :  { %v597_v37 = vsel %vm594_vm2, %v596_v33, %v592_v36 }
 0x6c5   :  { %v598_v39 = vmul.f32 %v597_v37, %v573_v34  ;;  %v1535_v34 = vld [vmem:[%s2211_s3 + $0x38] sm:$0xff] }
 0x6c6   :  { %766 = vmatpush.msra.mxu1 %v1535_v34 }
 0x6c7   :  { %v1527_v41 = vclamps-f32 %v598_v39, 1.0 }
 0x6c9   :  { %v641_v43 = vadd.f32 1.0, %v1527_v41  ;;  %v1534_v41 = vld [vmem:[%s2211_s3 + $0x30] sm:$0xff] }
 0x6ca   :  { %767 = vmatpush.msra.mxu1 %v1534_v41 }
 0x6cb   :  { %v643_v44 = vmul.f32 %v641_v43, %v550_v42  ;;  %v1533_v42 = vld [vmem:[%s2211_s3 + $0x28] sm:$0xff] }
 0x6cc   :  { %768 = vmatpush.msra.mxu1 %v1533_v42 }
 0x6cd   :  { %1529 = vmatmul.msk.f32.vlgmr.msrb.gmra.mxu2 %vm654_vm3, %v643_v44  ;;  %v1532_v44 = vld [vmem:[%s2211_s3 + $0x20] sm:$0xff] }
 0x6ce   :  { %769 = vmatpush.msra.mxu1 %v1532_v44 }
 0x703   :  { %v468_v45 = vpop.xlane.xlu0 %467 }
 0x704   :  { %v470_v46 = vmul.f32 %v468_v45, %v1779_v10 }
 0x706   :  { %v472_v48 = vsub.f32 %v1914_v47, %v470_v46 }
 0x708   :  { %v474_v49 = vmul.f32 %v472_v48, %v472_v48 }
 0x70a   :  { %v478_v50 = vsel %vm48_vm0, %v474_v49, 0.0 }
 0x70b   :  { %479 = vadd.xlane.f32.xlu1 %v478_v50 }
 0x750   :  { %v678_v53 = vpop.f32.mrf.mxu2 }
 0x751   :  { %v679_v56 = vadd.f32 %v678_v53, %v653_v54 }
 0x753   :  { %v684_v57 = vadd.f32 %v679_v56, %v1909_v40 }
 0x755   :  { %v686_v58 = vsel %vm48_vm0, %v684_v57, 0.0 }
 0x756   :  { %687 = vadd.xlane.f32.xlu1 %v686_v58 }
 0x77e   :  { %v480_v59 = vpop.xlane.xlu1 %479 }
 0x77f   :  { %v482_v60 = vmul.f32 %v480_v59, %v1779_v10 }
 0x781   :  { %v484_v61 = vadd.f32 1e-12, %v482_v60 }
 0x783   :  { %1621 = vrsqrt.f32 %v484_v61  ;;  %vm501_vm5 = vweird.f32 %v484_v61 }
 0x789   :  { %v1622_v47 = vpop.eup %1621 }
 0x78a   :  { %v496_v62 = vmul.f32 %v1622_v47, %v484_v61  ;;  %vm502_vm4 = vweird.f32 %v1622_v47 }
 0x78b   :  { %vm503_vm6 = vmor %vm501_vm5, %vm502_vm4 }
 0x78c   :  { %v497_v63 = vmul.f32 %v1622_v47, %v496_v62 }
 0x78e   :  { %v498_v1 = vmul.f32 0.5, %v497_v63 }
 0x790   :  { %v499_v2 = vsub.f32 1.5, %v498_v1 }
 0x792   :  { %v500_v3 = vmul.f32 %v1622_v47, %v499_v2 }
 0x794   :  { %v504_v5 = vsel %vm503_vm6, %v1622_v47, %v500_v3 }
 0x795   :  { %v506_v6 = vmul.f32 %v504_v5, %v472_v48 }
 0x797   :  { %v509_v40 = vmul.f32 %v507_v35, %v506_v6 }
 0x799   :  { %v1965_v7 = vadd.f32 %v510_v38, %v509_v40 }
 0x79b   :  { %1526 = vmatmul.msk.f32.gmra.mxu0 %vm48_vm0, %v1965_v7 }
 0x7c9   :  { %v688_v8 = vpop.xlane.xlu1 %687 }
 0x7ca   :  { %v692_v9 = vmul.f32 %v688_v8, %v1779_v10 }
 0x7cc   :  { %v1970_v11 = vsub.f32 %v684_v57, %v692_v9 }
 0x7ce   :  { %v696_v12 = vmul.f32 %v1970_v11, %v1970_v11 }
 0x7d0   :  { %v698_v13 = vsel %vm48_vm0, %v696_v12, 0.0  ;;  %v730_v12 = vperm.slane %v1879_v4, 4 }
 0x7d1   :  { %699 = vadd.xlane.f32.xlu1 %v698_v13 }
 0x818   :  { %v547_v14 = vpop.f32.mrf.mxu0 }
 0x819   :  { %v548_v35 = vadd.f32 %v1921_v52, %v547_v14 }
 0x81b   :  { %v560_v38 = vmul.f32 %v1923_v55, %v548_v35  ;;  %v551_v63 = vmul.f32 0.5, %v548_v35  ;;  %v733_v35 = vperm.slane %v1879_v4, 5 }
 0x81d   :  { %v601_v15 = vmul.f32 %v560_v38, %v560_v38 }
 0x81f   :  { %v602_v16 = vmin.f32 %v601_v15, 16.0 }
 0x821   :  { %v603_v17 = vmul.f32 2.1237322e-06, %v602_v16  ;;  %v614_v18 = vmul.f32 3.8918573e-05, %v602_v16 }
 0x823   :  { %v604_v19 = vadd.f32 0.00028619796, %v603_v17  ;;  %v615_v51 = vadd.f32 0.001143296, %v614_v18 }
 0x825   :  { %v605_v20 = vmul.f32 %v604_v19, %v602_v16  ;;  %v616_v21 = vmul.f32 %v615_v51, %v602_v16 }
 0x827   :  { %v617_v22 = vadd.f32 0.014752088, %v616_v21  ;;  %v606_v23 = vadd.f32 0.0036580483, %v605_v20 }
 0x829   :  { %v618_v24 = vmul.f32 %v617_v22, %v602_v16  ;;  %v607_v26 = vmul.f32 %v606_v23, %v602_v16 }
 0x82b   :  { %v619_v25 = vadd.f32 0.112945676, %v618_v24  ;;  %v608_v30 = vadd.f32 0.05243302, %v607_v26 }
 0x82d   :  { %v620_v27 = vmul.f32 %v619_v25, %v602_v16  ;;  %v609_v32 = vmul.f32 %v608_v30, %v602_v16 }
 0x82f   :  { %v621_v29 = vadd.f32 0.4994258, %v620_v27  ;;  %v610_v33 = vadd.f32 0.18741608, %v609_v32 }
 0x831   :  { %v622_v31 = vmul.f32 %v621_v29, %v602_v16  ;;  %v611_v37 = vmul.f32 %v610_v33, %v602_v16 }
 0x833   :  { %v623_v52 = vadd.f32 1.0, %v622_v31  ;;  %v612_v46 = vadd.f32 1.1283791, %v611_v37 }
 0x835   :  { %1623 = vrcp.f32 %v623_v52  ;;  %v635_v45 = vand.u32 2147483648, %v623_v52  ;;  %v633_v49 = vand.u32 2147483647, %v623_v52  ;;  %vm629_vm10 = vweird.f32 %v623_v52 }
 0x836   :  { %v613_v56 = vmul.f32 %v612_v46, %v560_v38 }
 0x837   :  { %v636_v53 = vor.u32 1.1754944e-38, %v635_v45  ;;  %vm634_vm12 = vcmp.eq.f32.partialorder %v633_v49, 8.507059e+37 }
 0x83b   :  { %v1624_v36 = vpop.eup %1623 }
 0x83c   :  { %v625_v39 = vmul.f32 %v1624_v36, %v623_v52  ;;  %vm630_vm7 = vweird.f32 %v1624_v36 }
 0x83d   :  { %vm631_vm11 = vmor %vm629_vm10, %vm630_vm7 }
 0x83e   :  { %v626_v43 = vsub.f32 1.0, %v625_v39 }
 0x840   :  { %v627_v48 = vmul.f32 %v1624_v36, %v626_v43 }
 0x842   :  { %v628_v50 = vadd.f32 %v1624_v36, %v627_v48 }
 0x844   :  { %v632_v57 = vsel %vm631_vm11, %v1624_v36, %v628_v50  ;;  %v700_v58 = vpop.xlane.xlu1 %699 }
 0x845   :  { %v637_v59 = vsel %vm634_vm12, %v636_v53, %v632_v57  ;;  %v704_v60 = vmul.f32 %v700_v58, %v1779_v10 }
 0x846   :  { %v638_v61 = vmul.f32 %v637_v59, %v613_v56 }
 0x847   :  { %v706_v47 = vadd.f32 1e-12, %v704_v60 }
 0x848   :  { %v1528_v62 = vclamps-f32 %v638_v61, 1.0 }
 0x849   :  { %1625 = vrsqrt.f32 %v706_v47  ;;  %vm714_vm14 = vweird.f32 %v706_v47 }
 0x84a   :  { %v642_v1 = vadd.f32 1.0, %v1528_v62 }
 0x84c   :  { %v644_v2 = vmul.f32 %v642_v1, %v551_v63 }
 0x84e   :  { %1530 = vmatmul.msk.f32.gmra.mxu2 %vm654_vm3, %v644_v2 }
 0x84f   :  { %v1626_v3 = vpop.eup %1625 }
 0x850   :  { %v709_v5 = vmul.f32 %v1626_v3, %v706_v47  ;;  %vm715_vm13 = vweird.f32 %v1626_v3 }
 0x851   :  { %vm716_vm15 = vmor %vm714_vm14, %vm715_vm13 }
 0x852   :  { %v710_v6 = vmul.f32 %v1626_v3, %v709_v5 }
 0x854   :  { %v711_v40 = vmul.f32 0.5, %v710_v6 }
 0x856   :  { %v712_v8 = vsub.f32 1.5, %v711_v40 }
 0x858   :  { %v713_v9 = vmul.f32 %v1626_v3, %v712_v8 }
 0x85a   :  { %v717_v13 = vsel %vm716_vm15, %v1626_v3, %v713_v9 }
 0x85b   :  { %v728_v14 = vmul.f32 %v717_v13, %v1970_v11  ;;  %v1590_v11 = vld [vmem:[%s2212_s4 + $0x1] ss:$0 sm:$0xff] }
 0x85d   :  { %v731_v38 = vmul.f32 %v730_v12, %v728_v14 }
 0x85f   :  { %v1994_v15 = vadd.f32 %v733_v35, %v731_v38 }
 0x861   :  { %1537 = vmatmul.msk.f32.vlgmr.msra.gmra.mxu1 %vm48_vm0, %v1994_v15 }
 0x8d1   :  { %v681_v16 = vpop.f32.mrf.mxu2 }
 0x8d2   :  { %v682_v17 = vadd.f32 %v681_v16, %v653_v54 }
 0x8d4   :  { %v685_v18 = vadd.f32 %v682_v17, %v1965_v7 }
 0x8d6   :  { %v689_v19 = vsel %vm48_vm0, %v685_v18, 0.0 }
 0x8d7   :  { %690 = vadd.xlane.f32.xlu1 %v689_v19 }
 0x8de   :  { %v771_v51 = vpop.f32.mrf.mxu1 }
 0x8df   :  { %v2005_v20 = vadd.f32 %v1590_v11, %v771_v51 }
 0x8e1   :  { %778 = vrot.lane.b32.xlu2 %v2005_v20, %s1694_s24 }
 0x93b   :  { %v779_v21 = vpop.permute.xlu2 %778 }
 0x93c   :  { %1539 = vmatpush.xpose.msk.msrb.mxu3 %vm150_vm8, %v779_v21 }
 0x93f   :  { %1540 = vmatmul.msk.f32.vlgmr.msrb.gmra.mxu3 %vm150_vm8, %v2005_v20 }
 0x94a   :  { %v691_v4 = vpop.xlane.xlu1 %690 }
 0x94b   :  { %v693_v54 = vmul.f32 %v691_v4, %v1779_v10 }
 0x94d   :  { %v695_v7 = vsub.f32 %v685_v18, %v693_v54 }
 0x94f   :  { %v697_v22 = vmul.f32 %v695_v7, %v695_v7 }
 0x951   :  { %v701_v23 = vsel %vm48_vm0, %v697_v22, 0.0 }
 0x952   :  { %702 = vadd.xlane.f32.xlu1 %v701_v23 }
 0x96b   :  { %845 = vrot.lane.b32.xlu1 %v2005_v20, %s1695_s25 }
 0x973   :  { %817 = vrot.lane.b32.xlu1 %v2005_v20, %s1696_s1 }
 0x9c2   :  { %v801_v24 = vpop.f32.mrf.mxu3 }
 0x9c3   :  { %v804_v25 = vmul.f32 0.25, %v801_v24 }
 0x9c5   :  { %v703_v26 = vpop.xlane.xlu1 %702  ;;  %v805_v27 = vadd.f32 %v804_v25, %v1823_v0 }
 0x9c6   :  { %v705_v29 = vmul.f32 %v703_v26, %v1779_v10 }
 0x9c7   :  { %v806_v30 = vsel %vm178_vm9, %v805_v27, -inf }
 0x9c8   :  { %v707_v31 = vadd.f32 1e-12, %v705_v29  ;;  %807 = vmax.xlane.f32.xlu0 %v806_v30 }
 0x9ca   :  { %1627 = vrsqrt.f32 %v707_v31  ;;  %vm724_vm2 = vweird.f32 %v707_v31 }
 0x9d0   :  { %v1628_v52 = vpop.eup %1627 }
 0x9d1   :  { %v719_v32 = vmul.f32 %v1628_v52, %v707_v31  ;;  %vm725_vm1 = vweird.f32 %v1628_v52 }
 0x9d2   :  { %vm726_vm4 = vmor %vm724_vm2, %vm725_vm1 }
 0x9d3   :  { %v720_v33 = vmul.f32 %v1628_v52, %v719_v32  ;;  %v1554_v32 = vld [vmem:[%s2213_s5 + $0x38] sm:$0xff] }
 0x9d5   :  { %v721_v34 = vmul.f32 0.5, %v720_v33  ;;  %v1553_v33 = vld [vmem:[%s2213_s5 + $0x30] sm:$0xff] }
 0x9d7   :  { %v722_v36 = vsub.f32 1.5, %v721_v34  ;;  %v1552_v34 = vld [vmem:[%s2213_s5 + $0x28] sm:$0xff] }
 0x9d9   :  { %v723_v37 = vmul.f32 %v1628_v52, %v722_v36 }
 0x9db   :  { %v727_v39 = vsel %vm726_vm4, %v1628_v52, %v723_v37 }
 0x9dc   :  { %843 = vrot.lane.b32.xlu0 %v2005_v20, %s1693_s23  ;;  %v729_v41 = vmul.f32 %v727_v39, %v695_v7 }
 0x9dd   :  { %v846_v42 = vpop.permute.xlu1 %845 }
 0x9de   :  { %1542 = vmatpush.xpose.msk.msrb.mxu1 %vm150_vm8, %v846_v42  ;;  %v732_v43 = vmul.f32 %v730_v12, %v729_v41 }
 0x9e0   :  { %v2024_v44 = vadd.f32 %v733_v35, %v732_v43  ;;  %v1551_v43 = vld [vmem:[%s2213_s5 + $0x20] sm:$0xff] }
 0x9e2   :  { %1538 = vmatmul.msk.f32.gmra.mxu1 %vm48_vm0, %v2024_v44 }
 0x9e5   :  { %v818_v45 = vpop.permute.xlu1 %817 }
 0x9e6   :  { %838 = vmatpush.msrb.mxu0 %v818_v45 }
 0xa3b   :  { %v808_v46 = vpop.xlane.xlu0 %807 }
 0xa3c   :  { %v809_v48 = vsub.f32 %v805_v27, %v808_v46 }
 0xa3e   :  { %v810_v49 = vmul.f32 1.442695, %v809_v48 }
 0xa40   :  { %1629 = vpow2.f32 %v810_v49 }
 0xa46   :  { %v1630_v50 = vpop.eup %1629 }
 0xa47   :  { %v812_v53 = vsel %vm178_vm9, %v1630_v50, 0.0 }
 0xa48   :  { %813 = vadd.xlane.f32.xlu0 %v812_v53 }
 0xa4e   :  { %v844_v56 = vpop.permute.xlu0 %843 }
 0xa4f   :  { %1543 = vmatmul.msk.f32.vlgmr.msrb.gmra.mxu1 %vm150_vm8, %v844_v56  ;;  %v2086_v56 = vld [vmem:[%s2214_s6 + $0x8] sm:$0x3f] }
 0xa5f   :  { %v774_v57 = vpop.f32.mrf.mxu1 }
 0xa60   :  { %v2030_v58 = vadd.f32 %v1590_v11, %v774_v57  ;;  %v1058_v57 = vperm.slane %v2086_v56, 0 }
 0xa62   :  { %983 = vrot.lane.b32.xlu2 %v2030_v58, %s1695_s25 }
 0xa6a   :  { %981 = vrot.lane.b32.xlu2 %v2030_v58, %s1693_s23 }
 0xa72   :  { %916 = vrot.lane.b32.xlu2 %v2030_v58, %s1694_s24 }
 0xabb   :  { %v814_v59 = vpop.xlane.xlu0 %813 }
 0xabc   :  { %1631 = vrcp.f32 %v814_v59  ;;  %v984_v60 = vpop.permute.xlu2 %983 }
 0xabd   :  { %1548 = vmatpush.xpose.msk.msra.mxu1 %vm150_vm8, %v984_v60 }
 0xac2   :  { %v1632_v61 = vpop.eup %1631 }
 0xac3   :  { %v816_v47 = vmul.f32 %v1632_v61, %v1630_v50 }
 0xac4   :  { %v982_v62 = vpop.permute.xlu2 %981 }
 0xac5   :  { %1541 = vmatmul.msk.f32.vlgmr.msrb.gmra.mxu0 %vm178_vm9, %v816_v47  ;;  %1549 = vmatmul.msk.f32.vlgmr.msra.gmra.mxu1 %vm150_vm8, %v982_v62 }
 0xacc   :  { %v917_v63 = vpop.permute.xlu2 %916  ;;  %v868_v1 = vpop.f32.mrf.mxu1 }
 0xacd   :  { %v871_v2 = vmul.f32 0.25, %v868_v1  ;;  %1545 = vmatpush.xpose.msk.msra.mxu0 %vm150_vm8, %v917_v63 }
 0xacf   :  { %v872_v3 = vadd.f32 %v871_v2, %v1823_v0 }
 0xad0   :  { %1546 = vmatmul.msk.f32.vlgmr.msra.gmra.mxu0 %vm150_vm8, %v2030_v58 }
 0xad1   :  { %v873_v5 = vsel %vm178_vm9, %v872_v3, -inf  ;;  %1077 = vmatpush.msrb.mxu0 %v1554_v32 }
 0xad2   :  { %874 = vmax.xlane.f32.xlu1 %v873_v5 }
 0xad3   :  { %1078 = vmatpush.msrb.mxu0 %v1553_v33 }
 0xad5   :  { %1079 = vmatpush.msrb.mxu0 %v1552_v34 }
 0xad7   :  { %1080 = vmatpush.msrb.mxu0 %v1551_v43 }
 0xb42   :  { %v1006_v6 = vpop.f32.mrf.mxu1  ;;  %v2047_v12 = vpop.f32.mrf.mxu0 }
 0xb43   :  { %v1009_v40 = vmul.f32 0.25, %v1006_v6 }
 0xb45   :  { %v875_v8 = vpop.xlane.xlu1 %874  ;;  %v1010_v9 = vadd.f32 %v1009_v40, %v1846_v28 }
 0xb46   :  { %v876_v13 = vsub.f32 %v872_v3, %v875_v8 }
 0xb47   :  { %v1011_v14 = vsel %vm178_vm9, %v1010_v9, -inf }
 0xb48   :  { %v877_v35 = vmul.f32 1.442695, %v876_v13  ;;  %1012 = vmax.xlane.f32.xlu2 %v1011_v14  ;;  %v1559_v14 = vld [vmem:[%s2215_s7 + $0x30] sm:$0xff] }
 0xb4a   :  { %1633 = vpow2.f32 %v877_v35  ;;  %v1558_v35 = vld [vmem:[%s2215_s7 + $0x28] sm:$0xff] }
 0xb4d   :  { %v939_v0 = vpop.f32.mrf.mxu0 }
 0xb4e   :  { %v942_v16 = vmul.f32 0.25, %v939_v0  ;;  %v1557_v0 = vld [vmem:[%s2215_s7 + $0x20] sm:$0xff] }
 0xb50   :  { %v1634_v38 = vpop.eup %1633  ;;  %v943_v18 = vadd.f32 %v942_v16, %v1846_v28 }
 0xb51   :  { %v879_v17 = vsel %vm178_vm9, %v1634_v38, 0.0 }
 0xb52   :  { %880 = vadd.xlane.f32.xlu0 %v879_v17  ;;  %v944_v19 = vsel %vm178_vm9, %v943_v18, -inf }
 0xb5a   :  { %945 = vmax.xlane.f32.xlu0 %v944_v19 }
 0xb60   :  { %884 = vrot.lane.b32.xlu2 %v2005_v20, %s1697_s28 }
 0xb6e   :  { %1022 = vrot.lane.b32.xlu0 %v2030_v58, %s1697_s28 }
 0xbbb   :  { %v1013_v11 = vpop.xlane.xlu2 %1012 }
 0xbbc   :  { %v1014_v51 = vsub.f32 %v1010_v9, %v1013_v11 }
 0xbbe   :  { %v1015_v21 = vmul.f32 1.442695, %v1014_v51 }
 0xbc0   :  { %1635 = vpow2.f32 %v1015_v21 }
 0xbc3   :  { %v885_v4 = vpop.permute.xlu2 %884 }
 0xbc4   :  { %905 = vmatpush.msra.mxu3 %v885_v4 }
 0xbc5   :  { %v881_v54 = vpop.xlane.xlu0 %880 }
 0xbc6   :  { %v1636_v7 = vpop.eup %1635  ;;  %1637 = vrcp.f32 %v881_v54  ;;  %v1134_v54 = vperm.slane %v2086_v56, 1 }
 0xbc7   :  { %v1017_v28 = vsel %vm178_vm9, %v1636_v7, 0.0 }
 0xbc8   :  { %1018 = vadd.xlane.f32.xlu1 %v1017_v28 }
 0xbcc   :  { %v1638_v22 = vpop.eup %1637 }
 0xbcd   :  { %v883_v23 = vmul.f32 %v1638_v22, %v1634_v38  ;;  %v946_v24 = vpop.xlane.xlu0 %945  ;;  %v1137_v22 = vperm.slane %v2086_v56, 2 }
 0xbce   :  { %v947_v25 = vsub.f32 %v943_v18, %v946_v24 }
 0xbcf   :  { %1544 = vmatmul.msk.f32.vlgmr.msra.gmra.mxu3 %vm178_vm9, %v883_v23 }
 0xbd0   :  { %v948_v20 = vmul.f32 1.442695, %v947_v25 }
 0xbd2   :  { %1639 = vpow2.f32 %v948_v20 }
 0xbd8   :  { %v1640_v26 = vpop.eup %1639 }
 0xbd9   :  { %v950_v27 = vsel %vm178_vm9, %v1640_v26, 0.0 }
 0xbda   :  { %951 = vadd.xlane.f32.xlu1 %v950_v27 }
 0xbe0   :  { %v1023_v29 = vpop.permute.xlu0 %1022 }
 0xbe1   :  { %1043 = vmatpush.msrb.mxu3 %v1023_v29 }
 0xbf3   :  { %955 = vrot.lane.b32.xlu1 %v2030_v58, %s1696_s1 }
 0xc3b   :  { %v1019_v30 = vpop.xlane.xlu1 %1018 }
 0xc3c   :  { %1641 = vrcp.f32 %v1019_v30 }
 0xc42   :  { %v1642_v31 = vpop.eup %1641 }
 0xc43   :  { %v1021_v52 = vmul.f32 %v1642_v31, %v1636_v7 }
 0xc45   :  { %1550 = vmatmul.msk.f32.vlgmr.msrb.gmra.mxu3 %vm178_vm9, %v1021_v52 }
 0xc4d   :  { %v952_v37 = vpop.xlane.xlu1 %951 }
 0xc4e   :  { %1643 = vrcp.f32 %v952_v37 }
 0xc52   :  { %v907_v36 = vpop.f32.mrf.mxu3 }
 0xc53   :  { %911 = vrot.lane.b32.xlu0 %v907_v36, %s1698_s0 }
 0xc54   :  { %v1644_v39 = vpop.eup %1643 }
 0xc55   :  { %v954_v41 = vmul.f32 %v1644_v39, %v1640_v26  ;;  %v2124_v39 = vld [vmem:[%s2216_s8 + $0x1] ss:$0 sm:$0xff] }
 0xc65   :  { %v956_v42 = vpop.permute.xlu1 %955 }
 0xc66   :  { %976 = vmatpush.msra.mxu2 %v956_v42 }
 0xc67   :  { %1547 = vmatmul.msk.f32.vlgmr.msra.gmra.mxu2 %vm178_vm9, %v954_v41 }
 0xcc5   :  { %v912_v45 = vpop.permute.xlu0 %911 }
 0xcc6   :  { %v914_v46 = vsel %vm150_vm8, %v2047_v12, %v912_v45 }
 0xcc7   :  { %1555 = vmatmul.msk.f32.vlgmr.msrb.gmra.mxu0 %vm48_vm0, %v914_v46 }
 0xcc8   :  { %v1045_v48 = vpop.f32.mrf.mxu3 }
 0xcc9   :  { %1049 = vrot.lane.b32.xlu2 %v1045_v48, %s1698_s0  ;;  %v1573_v48 = vld [vmem:[%s2217_s9 + $0x78] sm:$0xff] }
 0xcca   :  { %1291 = vmatpush.msrb.mxu1 %v1573_v48 }
 0xcea   :  { %v978_v49 = vpop.f32.mrf.mxu2 }
 0xd23   :  { %v1050_v50 = vpop.permute.xlu2 %1049 }
 0xd24   :  { %v1052_v53 = vsel %vm150_vm8, %v978_v49, %v1050_v50 }
 0xd25   :  { %1556 = vmatmul.msk.f32.gmra.mxu0 %vm48_vm0, %v1052_v53  ;;  %v1572_v53 = vld [vmem:[%s2217_s9 + $0x70] sm:$0xff] }
 0xd26   :  { %1292 = vmatpush.msrb.mxu1 %v1572_v53 }
 0xd44   :  { %v1082_v58 = vpop.f32.mrf.mxu0 }
 0xd45   :  { %v1083_v59 = vadd.f32 %v1082_v58, %v1058_v57 }
 0xd47   :  { %v1088_v60 = vadd.f32 %v1083_v59, %v1994_v15  ;;  %v1571_v59 = vld [vmem:[%s2217_s9 + $0x68] sm:$0xff] }
 0xd48   :  { %1293 = vmatpush.msrb.mxu1 %v1571_v59 }
 0xd49   :  { %v1090_v61 = vsel %vm48_vm0, %v1088_v60, 0.0 }
 0xd4a   :  { %1091 = vadd.xlane.f32.xlu0 %v1090_v61 }
 0xda2   :  { %v1085_v47 = vpop.f32.mrf.mxu0 }
 0xda3   :  { %v1086_v62 = vadd.f32 %v1085_v47, %v1058_v57  ;;  %v1570_v47 = vld [vmem:[%s2217_s9 + $0x60] sm:$0xff] }
 0xda4   :  { %1294 = vmatpush.msrb.mxu1 %v1570_v47 }
 0xda5   :  { %v1089_v63 = vadd.f32 %v1086_v62, %v2024_v44  ;;  %v1560_v44 = vld [vmem:[%s2215_s7 + $0x38] sm:$0xff] }
 0xda6   :  { %1168 = vmatpush.msrb.mxu2 %v1560_v44 }
 0xda7   :  { %v1093_v1 = vsel %vm48_vm0, %v1089_v63, 0.0 }
 0xda8   :  { %1094 = vadd.xlane.f32.xlu2 %v1093_v1  ;;  %1169 = vmatpush.msrb.mxu2 %v1559_v14 }
 0xdaa   :  { %1170 = vmatpush.msrb.mxu2 %v1558_v35 }
 0xdac   :  { %1171 = vmatpush.msrb.mxu2 %v1557_v0 }
 0xdbd   :  { %v1092_v2 = vpop.xlane.xlu0 %1091 }
 0xdbe   :  { %v1096_v3 = vmul.f32 %v1092_v2, %v1779_v10 }
 0xdc0   :  { %v1098_v5 = vsub.f32 %v1088_v60, %v1096_v3  ;;  %v1568_v3 = vld [vmem:[%s2217_s9 + $0x50] sm:$0xff] }
 0xdc2   :  { %v1100_v6 = vmul.f32 %v1098_v5, %v1098_v5 }
 0xdc4   :  { %v1102_v40 = vsel %vm48_vm0, %v1100_v6, 0.0  ;;  %v1567_v6 = vld [vmem:[%s2217_s9 + $0x48] sm:$0xff] }
 0xdc5   :  { %1103 = vadd.xlane.f32.xlu1 %v1102_v40 }
 0xe1b   :  { %v1095_v8 = vpop.xlane.xlu2 %1094 }
 0xe1c   :  { %v1097_v15 = vmul.f32 %v1095_v8, %v1779_v10  ;;  %v1566_v8 = vld [vmem:[%s2217_s9 + $0x40] sm:$0xff] }
 0xe1e   :  { %v1099_v9 = vsub.f32 %v1089_v63, %v1097_v15  ;;  %v1569_v63 = vld [vmem:[%s2217_s9 + $0x58] sm:$0xff] }
 0xe1f   :  { %1295 = vmatpush.msrb.mxu1 %v1569_v63 }
 0xe20   :  { %v1101_v12 = vmul.f32 %v1099_v9, %v1099_v9 }
 0xe21   :  { %1296 = vmatpush.msrb.mxu1 %v1568_v3 }
 0xe22   :  { %v1105_v13 = vsel %vm48_vm0, %v1101_v12, 0.0 }
 0xe23   :  { %1106 = vadd.xlane.f32.xlu2 %v1105_v13  ;;  %1297 = vmatpush.msrb.mxu1 %v1567_v6 }
 0xe25   :  { %1298 = vmatpush.msrb.mxu1 %v1566_v8 }
 0xe38   :  { %v1104_v38 = vpop.xlane.xlu1 %1103 }
 0xe39   :  { %v1108_v16 = vmul.f32 %v1104_v38, %v1779_v10 }
 0xe3b   :  { %v1110_v17 = vadd.f32 1e-12, %v1108_v16 }
 0xe3d   :  { %1645 = vrsqrt.f32 %v1110_v17  ;;  %vm1118_vm9 = vweird.f32 %v1110_v17 }
 0xe43   :  { %v1646_v18 = vpop.eup %1645 }
 0xe44   :  { %v1113_v19 = vmul.f32 %v1646_v18, %v1110_v17  ;;  %vm1119_vm8 = vweird.f32 %v1646_v18 }
 0xe45   :  { %vm1120_vm5 = vmor %vm1118_vm9, %vm1119_vm8 }
 0xe46   :  { %v1114_v11 = vmul.f32 %v1646_v18, %v1113_v19 }
 0xe48   :  { %v1115_v51 = vmul.f32 0.5, %v1114_v11 }
 0xe4a   :  { %v1116_v21 = vsub.f32 1.5, %v1115_v51 }
 0xe4c   :  { %v1117_v4 = vmul.f32 %v1646_v18, %v1116_v21 }
 0xe4e   :  { %v1121_v7 = vsel %vm1120_vm5, %v1646_v18, %v1117_v4 }
 0xe4f   :  { %v1132_v28 = vmul.f32 %v1121_v7, %v1098_v5 }
 0xe51   :  { %v1135_v23 = vmul.f32 %v1134_v54, %v1132_v28 }
 0xe53   :  { %v2112_v24 = vadd.f32 %v1137_v22, %v1135_v23 }
 0xe55   :  { %1562 = vmatmul.msk.f32.vlgmr.msrb.gmra.mxu2 %vm48_vm0, %v2112_v24 }
 0xe96   :  { %v1107_v25 = vpop.xlane.xlu2 %1106 }
 0xe97   :  { %v1109_v20 = vmul.f32 %v1107_v25, %v1779_v10 }
 0xe99   :  { %v1111_v26 = vadd.f32 1e-12, %v1109_v20 }
 0xe9b   :  { %1647 = vrsqrt.f32 %v1111_v26  ;;  %vm1128_vm7 = vweird.f32 %v1111_v26 }
 0xea1   :  { %v1648_v27 = vpop.eup %1647 }
 0xea2   :  { %v1123_v29 = vmul.f32 %v1648_v27, %v1111_v26  ;;  %vm1129_vm6 = vweird.f32 %v1648_v27 }
 0xea3   :  { %vm1130_vm10 = vmor %vm1128_vm7, %vm1129_vm6 }
 0xea4   :  { %v1124_v30 = vmul.f32 %v1648_v27, %v1123_v29 }
 0xea6   :  { %v1125_v31 = vmul.f32 0.5, %v1124_v30 }
 0xea8   :  { %v1126_v52 = vsub.f32 1.5, %v1125_v31 }
 0xeaa   :  { %v1127_v32 = vmul.f32 %v1648_v27, %v1126_v52 }
 0xeac   :  { %v1131_v33 = vsel %vm1130_vm10, %v1648_v27, %v1127_v32  ;;  %vm1361_vm10 = vcmask 1040384  }
 0xead   :  { %v1133_v34 = vmul.f32 %v1131_v33, %v1099_v9 }
 0xeaf   :  { %v1136_v36 = vmul.f32 %v1134_v54, %v1133_v34 }
 0xeb1   :  { %v2117_v37 = vadd.f32 %v1137_v22, %v1136_v36 }
 0xeb3   :  { %1563 = vmatmul.msk.f32.gmra.mxu2 %vm48_vm0, %v2117_v37 }
 0xed8   :  { %v1173_v41 = vpop.f32.mrf.mxu2 }
 0xed9   :  { %v1174_v42 = vadd.f32 %v2124_v39, %v1173_v41 }
 0xedb   :  { %v1181_v43 = vmul.f32 %v1174_v42, %v1923_v55  ;;  %v1179_v25 = vmul.f32 0.5, %v1174_v42 }
 0xedd   :  { %v1183_v45 = vmul.f32 %v1181_v43, %v1181_v43 }
 0xedf   :  { %v1184_v46 = vmin.f32 %v1183_v45, 16.0 }
 0xee1   :  { %v1185_v49 = vmul.f32 2.1237322e-06, %v1184_v46  ;;  %v1196_v50 = vmul.f32 3.8918573e-05, %v1184_v46 }
 0xee3   :  { %v1186_v57 = vadd.f32 0.00028619796, %v1185_v49  ;;  %v1197_v58 = vadd.f32 0.001143296, %v1196_v50 }
 0xee5   :  { %v1187_v60 = vmul.f32 %v1186_v57, %v1184_v46  ;;  %v1198_v61 = vmul.f32 %v1197_v58, %v1184_v46 }
 0xee7   :  { %v1199_v62 = vadd.f32 0.014752088, %v1198_v61  ;;  %v1188_v1 = vadd.f32 0.0036580483, %v1187_v60 }
 0xee9   :  { %v1200_v2 = vmul.f32 %v1199_v62, %v1184_v46  ;;  %v1189_v40 = vmul.f32 %v1188_v1, %v1184_v46 }
 0xeeb   :  { %v1201_v5 = vadd.f32 0.112945676, %v1200_v2  ;;  %v1190_v12 = vadd.f32 0.05243302, %v1189_v40 }
 0xeed   :  { %v1202_v15 = vmul.f32 %v1201_v5, %v1184_v46  ;;  %v1191_v14 = vmul.f32 %v1190_v12, %v1184_v46 }
 0xeef   :  { %v1203_v9 = vadd.f32 0.4994258, %v1202_v15  ;;  %v1192_v35 = vadd.f32 0.18741608, %v1191_v14 }
 0xef1   :  { %v1204_v13 = vmul.f32 %v1203_v9, %v1184_v46  ;;  %v1193_v38 = vmul.f32 %v1192_v35, %v1184_v46 }
 0xef3   :  { %v1205_v44 = vadd.f32 1.0, %v1204_v13  ;;  %v1194_v19 = vadd.f32 1.1283791, %v1193_v38 }
 0xef5   :  { %1649 = vrcp.f32 %v1205_v44  ;;  %v1217_v18 = vand.u32 2147483648, %v1205_v44  ;;  %v1215_v51 = vand.u32 2147483647, %v1205_v44  ;;  %vm1211_vm12 = vweird.f32 %v1205_v44 }
 0xef6   :  { %v1195_v54 = vmul.f32 %v1194_v19, %v1181_v43 }
 0xef7   :  { %v1218_v4 = vor.u32 1.1754944e-38, %v1217_v18  ;;  %vm1216_vm14 = vcmp.eq.f32.partialorder %v1215_v51, 8.507059e+37 }
 0xefb   :  { %v1650_v0 = vpop.eup %1649 }
 0xefc   :  { %v1207_v16 = vmul.f32 %v1650_v0, %v1205_v44  ;;  %vm1212_vm11 = vweird.f32 %v1650_v0 }
 0xefd   :  { %vm1213_vm13 = vmor %vm1211_vm12, %vm1212_vm11 }
 0xefe   :  { %v1208_v17 = vsub.f32 1.0, %v1207_v16 }
 0xf00   :  { %v1209_v11 = vmul.f32 %v1650_v0, %v1208_v17 }
 0xf02   :  { %v1210_v21 = vadd.f32 %v1650_v0, %v1209_v11 }
 0xf04   :  { %v1214_v7 = vsel %vm1213_vm13, %v1650_v0, %v1210_v21  ;;  %v1276_v0 = vperm.slane %v2086_v56, 3 }
 0xf05   :  { %v1219_v28 = vsel %vm1216_vm14, %v1218_v4, %v1214_v7  ;;  %vm1467_vm14 = vcmask 17408  }
 0xf06   :  { %v1220_v22 = vmul.f32 %v1219_v28, %v1195_v54 }
 0xf08   :  { %v1564_v23 = vclamps-f32 %v1220_v22, 1.0 }
 0xf0a   :  { %v1263_v20 = vadd.f32 1.0, %v1564_v23 }
 0xf0c   :  { %v1265_v26 = vmul.f32 %v1263_v20, %v1179_v25 }
 0xf0e   :  { %1574 = vmatmul.msk.f32.vlgmr.msrb.gmra.mxu1 %vm654_vm3, %v1265_v26 }
 0xf36   :  { %v1176_v27 = vpop.f32.mrf.mxu2 }
 0xf37   :  { %v1177_v29 = vadd.f32 %v2124_v39, %v1176_v27 }
 0xf39   :  { %v1182_v30 = vmul.f32 %v1177_v29, %v1923_v55  ;;  %v1180_v44 = vmul.f32 0.5, %v1177_v29 }
 0xf3b   :  { %v1223_v31 = vmul.f32 %v1182_v30, %v1182_v30 }
 0xf3d   :  { %v1224_v52 = vmin.f32 %v1223_v31, 16.0  ;;  %v1365_v31 = vld [vmem:[%s2218_s10 + $0x10] sm:$0xff] }
 0xf3f   :  { %v1225_v32 = vmul.f32 2.1237322e-06, %v1224_v52  ;;  %v1236_v33 = vmul.f32 3.8918573e-05, %v1224_v52 }
 0xf41   :  { %v1226_v34 = vadd.f32 0.00028619796, %v1225_v32  ;;  %v1237_v36 = vadd.f32 0.001143296, %v1236_v33  ;;  %v1364_v32 = vld [vmem:[%s2218_s10 + $0x8] sm:$0xff]  ;;  %v1363_v33 = vld [vmem:[%s2218_s10] sm:$0xff] }
 0xf43   :  { %v1227_v41 = vmul.f32 %v1226_v34, %v1224_v52  ;;  %v1238_v43 = vmul.f32 %v1237_v36, %v1224_v52 }
 0xf45   :  { %v1239_v45 = vadd.f32 0.014752088, %v1238_v43  ;;  %v1228_v46 = vadd.f32 0.0036580483, %v1227_v41 }
 0xf47   :  { %v1240_v42 = vmul.f32 %v1239_v45, %v1224_v52  ;;  %v1229_v49 = vmul.f32 %v1228_v46, %v1224_v52 }
 0xf49   :  { %v1241_v48 = vadd.f32 0.112945676, %v1240_v42  ;;  %v1230_v57 = vadd.f32 0.05243302, %v1229_v49 }
 0xf4b   :  { %v1242_v50 = vmul.f32 %v1241_v48, %v1224_v52  ;;  %v1231_v59 = vmul.f32 %v1230_v57, %v1224_v52 }
 0xf4d   :  { %v1243_v53 = vadd.f32 0.4994258, %v1242_v50  ;;  %v1232_v60 = vadd.f32 0.18741608, %v1231_v59 }
 0xf4f   :  { %v1244_v58 = vmul.f32 %v1243_v53, %v1224_v52  ;;  %v1233_v47 = vmul.f32 %v1232_v60, %v1224_v52 }
 0xf51   :  { %v1245_v39 = vadd.f32 1.0, %v1244_v58  ;;  %v1234_v2 = vadd.f32 1.1283791, %v1233_v47 }
 0xf53   :  { %1651 = vrcp.f32 %v1245_v39  ;;  %v1257_v1 = vand.u32 2147483648, %v1245_v39  ;;  %v1255_v5 = vand.u32 2147483647, %v1245_v39  ;;  %vm1251_vm1 = vweird.f32 %v1245_v39 }
 0xf54   :  { %v1235_v8 = vmul.f32 %v1234_v2, %v1182_v30  ;;  %v1366_v30 = vld [vmem:[%s2218_s10 + $0x18] sm:$0xff] }
 0xf55   :  { %v1258_v40 = vor.u32 1.1754944e-38, %v1257_v1  ;;  %vm1256_vm4 = vcmp.eq.f32.partialorder %v1255_v5, 8.507059e+37  ;;  %1383 = vmatpush.msra.mxu3 %v1366_v30  ;;  %v1355_v1 = vperm.slane %v2086_v56, 5 }
 0xf57   :  { %1384 = vmatpush.msra.mxu3 %v1365_v31 }
 0xf59   :  { %v1652_v61 = vpop.eup %1651  ;;  %1385 = vmatpush.msra.mxu3 %v1364_v32 }
 0xf5a   :  { %v1247_v62 = vmul.f32 %v1652_v61, %v1245_v39  ;;  %vm1252_vm15 = vweird.f32 %v1652_v61 }
 0xf5b   :  { %vm1253_vm2 = vmor %vm1251_vm1, %vm1252_vm15  ;;  %1386 = vmatpush.msra.mxu3 %v1363_v33 }
 0xf5c   :  { %v1248_v63 = vsub.f32 1.0, %v1247_v62 }
 0xf5e   :  { %v1249_v3 = vmul.f32 %v1652_v61, %v1248_v63 }
 0xf60   :  { %v1250_v6 = vadd.f32 %v1652_v61, %v1249_v3 }
 0xf62   :  { %v1254_v15 = vsel %vm1253_vm2, %v1652_v61, %v1250_v6 }
 0xf63   :  { %v1259_v9 = vsel %vm1256_vm4, %v1258_v40, %v1254_v15  ;;  %v1395_v40 = vld [vmem:[%s2219_s11 + $0x18] sm:$0xff]  ;;  %v1392_v15 = vld [vmem:[%s2219_s11] sm:$0xff] }
 0xf64   :  { %v1260_v12 = vmul.f32 %v1259_v9, %v1235_v8  ;;  %v1394_v8 = vld [vmem:[%s2219_s11 + $0x10] sm:$0xff]  ;;  %1415 = vmatpush.msrb.mxu3 %v1395_v40  ;;  %v1665_v9 = vld [vmem:[%s2210_s2] sm:$0x7]  ;;  %s1700_s2 = smov [#allocation2]  }
 0xf66   :  { %v1565_v13 = vclamps-f32 %v1260_v12, 1.0  ;;  %1416 = vmatpush.msrb.mxu3 %v1394_v8  ;;  %v1367_v12 = vperm.slane %v1665_v9, 2 }
 0xf68   :  { %v1264_v14 = vadd.f32 1.0, %v1565_v13 }
 0xf6a   :  { %v1266_v35 = vmul.f32 %v1264_v14, %v1180_v44 }
 0xf6c   :  { %1575 = vmatmul.msk.f32.gmra.mxu1 %vm654_vm3, %v1266_v35  ;;  %v1592_v35 = vld [vmem:[%s2220_s12] ss:$0 sm:$0xff] }
 0xf8b   :  { %v1300_v38 = vpop.f32.mrf.mxu1 }
 0xf8c   :  { %v1301_v16 = vadd.f32 %v1300_v38, %v1276_v0 }
 0xf8e   :  { %v1306_v17 = vadd.f32 %v1301_v16, %v2112_v24 }
 0xf90   :  { %v1308_v18 = vsel %vm48_vm0, %v1306_v17, 0.0 }
 0xf91   :  { %1309 = vadd.xlane.f32.xlu1 %v1308_v18 }
 0xfe9   :  { %v1303_v19 = vpop.f32.mrf.mxu1 }
 0xfea   :  { %v1304_v11 = vadd.f32 %v1303_v19, %v1276_v0 }
 0xfec   :  { %v1307_v51 = vadd.f32 %v1304_v11, %v2117_v37 }
 0xfee   :  { %v1311_v21 = vsel %vm48_vm0, %v1307_v51, 0.0 }
 0xfef   :  { %1312 = vadd.xlane.f32.xlu0 %v1311_v21 }
0x1004   :  { %v1310_v4 = vpop.xlane.xlu1 %1309 }
0x1005   :  { %v1314_v54 = vmul.f32 %v1310_v4, %v1779_v10 }
0x1007   :  { %v1316_v7 = vsub.f32 %v1306_v17, %v1314_v54 }
0x1009   :  { %v1318_v28 = vmul.f32 %v1316_v7, %v1316_v7 }
0x100b   :  { %v1320_v22 = vsel %vm48_vm0, %v1318_v28, 0.0 }
0x100c   :  { %1321 = vadd.xlane.f32.xlu0 %v1320_v22 }
0x1062   :  { %v1313_v23 = vpop.xlane.xlu0 %1312 }
0x1063   :  { %v1315_v24 = vmul.f32 %v1313_v23, %v1779_v10 }
0x1065   :  { %v1317_v25 = vsub.f32 %v1307_v51, %v1315_v24 }
0x1067   :  { %v1319_v20 = vmul.f32 %v1317_v25, %v1317_v25 }
0x1069   :  { %v1323_v26 = vsel %vm48_vm0, %v1319_v20, 0.0 }
0x106a   :  { %1324 = vadd.xlane.f32.xlu2 %v1323_v26 }
0x107f   :  { %v1322_v37 = vpop.xlane.xlu0 %1321 }
0x1080   :  { %v1326_v27 = vmul.f32 %v1322_v37, %v1779_v10 }
0x1082   :  { %v1328_v29 = vadd.f32 1e-12, %v1326_v27 }
0x1084   :  { %1653 = vrsqrt.f32 %v1328_v29  ;;  %vm1336_vm8 = vweird.f32 %v1328_v29 }
0x108a   :  { %v1654_v52 = vpop.eup %1653 }
0x108b   :  { %v1331_v34 = vmul.f32 %v1654_v52, %v1328_v29  ;;  %vm1337_vm3 = vweird.f32 %v1654_v52 }
0x108c   :  { %vm1338_vm9 = vmor %vm1336_vm8, %vm1337_vm3 }
0x108d   :  { %v1332_v43 = vmul.f32 %v1654_v52, %v1331_v34 }
0x108f   :  { %v1333_v46 = vmul.f32 0.5, %v1332_v43 }
0x1091   :  { %v1334_v42 = vsub.f32 1.5, %v1333_v46 }
0x1093   :  { %v1335_v50 = vmul.f32 %v1654_v52, %v1334_v42 }
0x1095   :  { %v1339_v58 = vsel %vm1338_vm9, %v1654_v52, %v1335_v50 }
0x1096   :  { %v1350_v60 = vmul.f32 %v1339_v58, %v1316_v7 }
0x10dd   :  { %v1325_v36 = vpop.xlane.xlu2 %1324 }
0x10de   :  { %v1327_v41 = vmul.f32 %v1325_v36, %v1779_v10  ;;  %v1352_v10 = vperm.slane %v2086_v56, 4  ;;  %v1393_v56 = vld [vmem:[%s2219_s11 + $0x8] sm:$0xff]  ;;  %s1498_s11 = sshll.u32 %s1700_s2, 4  ;;  %s1499_s11 = int_to_ptr.vmem [resolvable:$true] %s1498_s11 }
0x10df   :  { %1417 = vmatpush.msrb.mxu3 %v1393_v56 }
0x10e0   :  { %v1329_v45 = vadd.f32 1e-12, %v1327_v41  ;;  %v1353_v62 = vmul.f32 %v1352_v10, %v1350_v60 }
0x10e1   :  { %1418 = vmatpush.msrb.mxu3 %v1392_v15 }
0x10e2   :  { %1655 = vrsqrt.f32 %v1329_v45  ;;  %vm1346_vm6 = vweird.f32 %v1329_v45  ;;  %v1356_v3 = vadd.f32 %v1355_v1, %v1353_v62 }
0x10e8   :  { %v1656_v48 = vpop.eup %1655 }
0x10e9   :  { %v1341_v49 = vmul.f32 %v1656_v48, %v1329_v45  ;;  %vm1347_vm5 = vweird.f32 %v1656_v48 }
0x10ea   :  { %vm1348_vm7 = vmor %vm1346_vm6, %vm1347_vm5 }
0x10eb   :  { %v1342_v53 = vmul.f32 %v1656_v48, %v1341_v49 }
0x10ed   :  { %v1343_v57 = vmul.f32 0.5, %v1342_v53 }
0x10ef   :  { %v1344_v39 = vsub.f32 1.5, %v1343_v57 }
0x10f1   :  { %v1345_v59 = vmul.f32 %v1656_v48, %v1344_v39 }
0x10f3   :  { %v1349_v61 = vsel %vm1348_vm7, %v1656_v48, %v1345_v59 }
0x10f4   :  { %v1351_v47 = vmul.f32 %v1349_v61, %v1317_v25 }
0x10f6   :  { %v1354_v63 = vmul.f32 %v1352_v10, %v1351_v47 }
0x10f8   :  { %v1357_v2 = vadd.f32 %v1355_v1, %v1354_v63 }
0x10fa   :  { %v1359_v5 = vrot.slane %v1357_v2, 7 }
0x10fc   :  { %v1362_v6 = vsel %vm1361_vm10, %v1356_v3, %v1359_v5 }
0x10fd   :  { %1576 = vmatmul.msk.f32.vlgmr.msra.gmra.mxu3 %vm48_vm0, %v1362_v6 }
0x1180   :  { %v1388_v13 = vpop.f32.mrf.mxu3 }
0x1181   :  { %v1389_v44 = vadd.f32 %v1388_v13, %v1367_v12 }
0x1183   :  { %1657 = vtanh.f32 %v1389_v44 }
0x1189   :  { %v1658_v14 = vpop.eup %1657 }
0x118a   :  { %1577 = vmatmul.msk.f32.vlgmr.msrb.gmra.mxu3 %vm48_vm0, %v1658_v14 }
0x120d   :  { %v1420_v0 = vpop.f32.mrf.mxu3 }
0x120e   :  { %v1421_v38 = vadd.f32 %v1592_v35, %v1420_v0 }
0x1210   :  { %v1424_v16 = vmul.f32 %v1421_v38, %v1923_v55  ;;  %v1423_v53 = vmul.f32 0.5, %v1421_v38 }
0x1212   :  { %v1425_v17 = vmul.f32 %v1424_v16, %v1424_v16 }
0x1214   :  { %v1426_v18 = vmin.f32 %v1425_v17, 16.0 }
0x1216   :  { %v1427_v19 = vmul.f32 2.1237322e-06, %v1426_v18  ;;  %v1438_v11 = vmul.f32 3.8918573e-05, %v1426_v18 }
0x1218   :  { %v1428_v51 = vadd.f32 0.00028619796, %v1427_v19  ;;  %v1439_v21 = vadd.f32 0.001143296, %v1438_v11 }
0x121a   :  { %v1429_v4 = vmul.f32 %v1428_v51, %v1426_v18  ;;  %v1440_v54 = vmul.f32 %v1439_v21, %v1426_v18 }
0x121c   :  { %v1441_v7 = vadd.f32 0.014752088, %v1440_v54  ;;  %v1430_v28 = vadd.f32 0.0036580483, %v1429_v4 }
0x121e   :  { %v1442_v22 = vmul.f32 %v1441_v7, %v1426_v18  ;;  %v1431_v24 = vmul.f32 %v1430_v28, %v1426_v18 }
0x1220   :  { %v1443_v23 = vadd.f32 0.112945676, %v1442_v22  ;;  %v1432_v26 = vadd.f32 0.05243302, %v1431_v24 }
0x1222   :  { %v1444_v25 = vmul.f32 %v1443_v23, %v1426_v18  ;;  %v1433_v29 = vmul.f32 %v1432_v26, %v1426_v18 }
0x1224   :  { %v1445_v20 = vadd.f32 0.4994258, %v1444_v25  ;;  %v1434_v55 = vadd.f32 0.18741608, %v1433_v29 }
0x1226   :  { %v1446_v37 = vmul.f32 %v1445_v20, %v1426_v18  ;;  %v1435_v31 = vmul.f32 %v1434_v55, %v1426_v18 }
0x1228   :  { %v1447_v27 = vadd.f32 1.0, %v1446_v37  ;;  %v1436_v34 = vadd.f32 1.1283791, %v1435_v31 }
0x122a   :  { %1659 = vrcp.f32 %v1447_v27  ;;  %v1459_v33 = vand.u32 2147483648, %v1447_v27  ;;  %v1457_v41 = vand.u32 2147483647, %v1447_v27  ;;  %vm1453_vm11 = vweird.f32 %v1447_v27 }
0x122b   :  { %v1437_v46 = vmul.f32 %v1436_v34, %v1424_v16 }
0x122c   :  { %v1460_v45 = vor.u32 1.1754944e-38, %v1459_v33  ;;  %vm1458_vm13 = vcmp.eq.f32.partialorder %v1457_v41, 8.507059e+37 }
0x1230   :  { %v1660_v30 = vpop.eup %1659 }
0x1231   :  { %v1449_v52 = vmul.f32 %v1660_v30, %v1447_v27  ;;  %vm1454_vm0 = vweird.f32 %v1660_v30 }
0x1232   :  { %vm1455_vm12 = vmor %vm1453_vm11, %vm1454_vm0 }
0x1233   :  { %v1450_v32 = vsub.f32 1.0, %v1449_v52 }
0x1235   :  { %v1451_v36 = vmul.f32 %v1660_v30, %v1450_v32 }
0x1237   :  { %v1452_v43 = vadd.f32 %v1660_v30, %v1451_v36 }
0x1239   :  { %v1456_v42 = vsel %vm1455_vm12, %v1660_v30, %v1452_v43 }
0x123a   :  { %v1461_v48 = vsel %vm1458_vm13, %v1460_v45, %v1456_v42 }
0x123b   :  { %v1462_v49 = vmul.f32 %v1461_v48, %v1437_v46 }
0x123d   :  { %v1578_v50 = vclamps-f32 %v1462_v49, 1.0 }
0x123f   :  { %v1465_v57 = vadd.f32 1.0, %v1578_v50 }
0x1241   :  { %v1466_v58 = vmul.f32 %v1465_v57, %v1423_v53 }
0x1243   :  { %v1468_v39 = vsel %vm1467_vm14, %v1466_v58, -inf }
0x1244   :  { %1469 = vmax.xlane.f32.xlu1 %v1468_v39 }
0x12b7   :  { %v1470_v59 = vpop.xlane.xlu1 %1469 }
0x12b8   :  { %v1471_v10 = vsub.f32 %v1466_v58, %v1470_v59 }
0x12ba   :  { %v1472_v60 = vmul.f32 1.442695, %v1471_v10 }
0x12bc   :  { %1661 = vpow2.f32 %v1472_v60 }
0x12c2   :  { %v1662_v61 = vpop.eup %1661 }
0x12c3   :  { %v1474_v47 = vsel %vm1467_vm14, %v1662_v61, 0.0 }
0x12c4   :  { %1475 = vadd.xlane.f32.xlu2 %v1474_v47 }
0x1337   :  { %v1476_v62 = vpop.xlane.xlu2 %1475 }
0x1338   :  { %1663 = vrcp.f32 %v1476_v62  ;;  %v1488_v3 = vand.u32 2147483648, %v1476_v62  ;;  %v1486_v6 = vand.u32 2147483647, %v1476_v62  ;;  %vm1482_vm1 = vweird.f32 %v1476_v62 }
0x133a   :  { %v1489_v8 = vor.u32 1.1754944e-38, %v1488_v3  ;;  %vm1487_vm4 = vcmp.eq.f32.partialorder %v1486_v6, 8.507059e+37 }
0x133e   :  { %v1664_v63 = vpop.eup %1663 }
0x133f   :  { %v1478_v1 = vmul.f32 %v1664_v63, %v1476_v62  ;;  %vm1483_vm15 = vweird.f32 %v1664_v63 }
0x1340   :  { %vm1484_vm2 = vmor %vm1482_vm1, %vm1483_vm15 }
0x1341   :  { %v1479_v2 = vsub.f32 1.0, %v1478_v1 }
0x1343   :  { %v1480_v5 = vmul.f32 %v1664_v63, %v1479_v2 }
0x1345   :  { %v1481_v40 = vadd.f32 %v1664_v63, %v1480_v5 }
0x1347   :  { %v1485_v56 = vsel %vm1484_vm2, %v1664_v63, %v1481_v40 }
0x1348   :  { %v1490_v15 = vsel %vm1487_vm4, %v1489_v8, %v1485_v56 }
0x1349   :  { %v1491_v9 = vmul.f32 %v1662_v61, %v1490_v15 }
0x134b   :  { %1492 = vst.msk [vmem:[#allocation2] sm:$0x3] %vm1467_vm14, %v1491_v9 }
0x134c   :  { %1503 = dma.vmem_to_hbm [thread:$0]  %s1499_s11, 32, %s1501_s18, [#allocation3]  }
0x134d   :  { %1690 = dma.done.wait [#allocation3], 32  }
0x134e   :  { %1691 = vsyncadd [#allocation3], 4294967264 }
0x134f   :  { %1508 = vsyncpa [#allocation3], 1 }

</bundles_post_ra>
